<compile_context>
chip_gen: v6e
topology: v6e:2x2x1
jax: 0.10.0
libtpu: 0.0.40
codegen_flags: <defaults>
</compile_context>

<pallas_src>
import numpy as np
import jax
import jax.numpy as jnp
from jax import lax
from jax.experimental import pallas as pl
from jax.experimental.pallas import tpu as pltpu

# ----------------------------- configuration --------------------------------
B = 2          # batch
C = 4          # input channels
HW = 16        # spatial size (H = W = 16)
P = 8          # patch size -> (16/8)^2 = 4 patches
D = 32         # embed dim (feat_dim for the LayerNorm head)
NH = 4         # attention heads
HD = D // NH   # head dim
MLP = 4 * D    # MLP hidden dim
DEPTH = 2      # transformer blocks
NPATCH = (HW // P) ** 2
N = NPATCH + 1          # tokens (patches + cls)
BN = B * N              # batch folded into the matmul M dimension
EPS = 1e-6
NEG = -1e30             # additive mask value (exp underflows to exactly 0)

_VMEM = pl.BlockSpec(memory_space=pltpu.MemorySpace.VMEM)

# -------- host-side compile-time constants (selection / mask matrices) -------
_bid = np.repeat(np.arange(B), N)                                                 # (BN,)
ATTN_BIAS = jnp.asarray(
    np.where(_bid[:, None] == _bid[None, :], 0.0, NEG).astype(np.float32))        # (BN, BN)
POOL = jnp.asarray((np.arange(B)[:, None] == _bid[None, :]).astype(np.float32))   # (B, BN)
SEL_CLS = jnp.asarray((np.arange(BN) % N == 0).astype(np.float32)[:, None])       # (BN, 1)
_selp = np.zeros((BN, B * NPATCH), np.float32)
for _b in range(B):
    for _i in range(NPATCH):
        _selp[_b * N + 1 + _i, _b * NPATCH + _i] = 1.0
SEL_PATCH = jnp.asarray(_selp)                                                     # (BN, B*NPATCH)

# Row layout of the packed (6 + 6*DEPTH, D) "vecs" slab:
#   0: patch_b   1: cls   2: vit_norm_g   3: vit_norm_b   4: head_norm_g   5: head_norm_b
#   per block d (base = 6 + 6*d): ln1_g, ln1_b, proj_b, ln2_g, ln2_b, fc2_b
_VEC_HEAD_ROWS = 6


def _layernorm(x, g, b):
    """LayerNorm over the last axis (biased variance), eps=1e-6."""
    mu = jnp.mean(x, axis=-1, keepdims=True)
    var = jnp.mean((x - mu) ** 2, axis=-1, keepdims=True)
    return (x - mu) * lax.rsqrt(var + EPS) * g + b


# ------------------------------- fused kernel --------------------------------
def fused_vit_kernel(xp_ref, pw_ref, selc_ref, selp_ref, pos_ref, bias_ref,
                     pool_ref, vec_ref, bqkv_ref, bfc1_ref,
                     wqkv_ref, wproj_ref, wfc1_ref, wfc2_ref, o_ref):
    def vrow(i):                                   # (1, D) parameter row
        return vec_ref[pl.ds(i, 1), :]

    # ---- patch embed: [B*NPATCH, C*P*P] @ [C*P*P, D] + b ----
    patches = (jnp.dot(xp_ref[...], pw_ref[...],
                       preferred_element_type=jnp.float32) + vrow(0))

    # ---- token assembly: cls broadcast + patch scatter + pos, as [BN, D] ----
    x = (selc_ref[...] * vrow(1)
         + jnp.dot(selp_ref[...], patches, preferred_element_type=jnp.float32)
         + pos_ref[...])

    bias = bias_ref[...]                           # block-diagonal batch mask (BN, BN)
    scale = 1.0 / (HD ** 0.5)

    for d in range(DEPTH):
        base = _VEC_HEAD_ROWS + 6 * d
        ln1g, ln1b = vrow(base + 0), vrow(base + 1)
        bproj = vrow(base + 2)
        ln2g, ln2b = vrow(base + 3), vrow(base + 4)
        bfc2 = vrow(base + 5)
        wqkv = wqkv_ref[pl.ds(d * D, D), :]        # (D, 3D)
        wp = wproj_ref[pl.ds(d * D, D), :]         # (D, D)
        wfc1 = wfc1_ref[pl.ds(d * D, D), :]        # (D, MLP)
        wfc2 = wfc2_ref[pl.ds(d * MLP, MLP), :]    # (MLP, D)
        bqkv = bqkv_ref[pl.ds(d, 1), :]            # (1, 3D)
        bfc1 = bfc1_ref[pl.ds(d, 1), :]            # (1, MLP)

        # ---- multi-head self attention (batch folded into M) ----
        h = _layernorm(x, ln1g, ln1b)
        qkv = jnp.dot(h, wqkv, preferred_element_type=jnp.float32) + bqkv   # (BN, 3D)
        q = qkv[:, 0 * D:1 * D] * scale            # scale folded into q (timm style)
        k = qkv[:, 1 * D:2 * D]
        v = qkv[:, 2 * D:3 * D]

        proj = bproj                               # (1, D), broadcasts on first add
        for hh in range(NH):                       # static loop, tiny dots per head
            sl = slice(hh * HD, (hh + 1) * HD)
            s = lax.dot_general(q[:, sl], k[:, sl], (((1,), (1,)), ((), ())),
                                preferred_element_type=jnp.float32) + bias
            m = jnp.max(s, axis=-1, keepdims=True)
            e = jnp.exp(s - m)
            a = e * pl.reciprocal(jnp.sum(e, axis=-1, keepdims=True), approx=True)
            oh = jnp.dot(a, v[:, sl], preferred_element_type=jnp.float32)   # (BN, HD)
            # fold head output straight into the projection -> no lane concat
            proj = proj + jnp.dot(oh, wp[sl, :], preferred_element_type=jnp.float32)
        x = x + proj

        # ---- MLP ----
        h2 = _layernorm(x, ln2g, ln2b)
        h2 = jnp.dot(h2, wfc1, preferred_element_type=jnp.float32) + bfc1
        # tanh-GELU for the synthetic backbone; PyTorch nn.GELU default is erf form.
        # TODO(synk): switch to erf-GELU if the real timm backbone's exact activation matters.
        h2 = jax.nn.gelu(h2, approximate=True)
        x = x + jnp.dot(h2, wfc2, preferred_element_type=jnp.float32) + bfc2

    # ---- final ViT token norm, mean over tokens, FeatureViT LayerNorm head ----
    t = _layernorm(x, vrow(2), vrow(3))                                            # (BN, D)
    f = jnp.dot(pool_ref[...], t, preferred_element_type=jnp.float32) * (1.0 / N)  # (B, D)
    o_ref[...] = _layernorm(f, vrow(4), vrow(5))


# ------------------------------ wrapper ---------------------------------------
def feature_vit_forward(x, params):
    Bsz, Cc, H, W = x.shape
    nh, nw = H // P, W // P
    # im2col glue (pure reshape/transpose, equivalent to stride-P Conv2d)
    xp = x.reshape(Bsz, Cc, nh, P, nw, P).transpose(0, 2, 4, 1, 3, 5)
    xp = xp.reshape(Bsz * nh * nw, Cc * P * P)

    args = [xp, params["patch_w"], SEL_CLS, SEL_PATCH, params["pos_tiled"],
            ATTN_BIAS, POOL, params["vecs"], params["bqkv"], params["bfc1"],
            params["wqkv"], params["wproj"], params["wfc1"], params["wfc2"]]

    return pl.pallas_call(
        fused_vit_kernel,
        out_shape=jax.ShapeDtypeStruct((B, D), jnp.float32),
        in_specs=[_VMEM] * len(args),
        out_specs=_VMEM,
    )(*args)


# ---------------------------- parameter init ----------------------------------
def init_params(key):
    def nrm(k, shape):
        return (jax.random.normal(k, shape, jnp.float32) * 0.02).astype(jnp.float32)

    keys = jax.random.split(key, 3 + DEPTH)
    patch_w = nrm(keys[0], (C * P * P, D))
    cls = nrm(keys[1], (1, D))
    pos = nrm(keys[2], (N, D))

    ones = jnp.ones((1, D), jnp.float32)
    zeros = jnp.zeros((1, D), jnp.float32)
    # head rows: patch_b, cls, vit_norm g/b, head_norm g/b
    vec_rows = [zeros, cls, ones, zeros, ones, zeros]
    wqkv_l, wproj_l, wfc1_l, wfc2_l, bqkv_l, bfc1_l = [], [], [], [], [], []
    for d in range(DEPTH):
        bk = jax.random.split(keys[3 + d], 4)
        wqkv_l.append(nrm(bk[0], (D, 3 * D)))
        wproj_l.append(nrm(bk[1], (D, D)))
        wfc1_l.append(nrm(bk[2], (D, MLP)))
        wfc2_l.append(nrm(bk[3], (MLP, D)))
        bqkv_l.append(jnp.zeros((1, 3 * D), jnp.float32))
        bfc1_l.append(jnp.zeros((1, MLP), jnp.float32))
        # per-block rows: ln1 g/b, proj bias, ln2 g/b, fc2 bias
        vec_rows += [ones, zeros, zeros, ones, zeros, zeros]

    # All packing happens ONCE here (outside the per-call path).
    return {
        "patch_w": patch_w,                                   # (C*P*P, D)
        "pos_tiled": jnp.tile(pos, (B, 1)),                   # (BN, D)
        "vecs": jnp.concatenate(vec_rows, axis=0),            # (6 + 6*DEPTH, D)
        "bqkv": jnp.concatenate(bqkv_l, axis=0),              # (DEPTH, 3D)
        "bfc1": jnp.concatenate(bfc1_l, axis=0),              # (DEPTH, MLP)
        "wqkv": jnp.concatenate(wqkv_l, axis=0),              # (DEPTH*D, 3D)
        "wproj": jnp.concatenate(wproj_l, axis=0),            # (DEPTH*D, D)
        "wfc1": jnp.concatenate(wfc1_l, axis=0),               # (DEPTH*D, MLP)
        "wfc2": jnp.concatenate(wfc2_l, axis=0),                # (DEPTH*MLP, D)
    }


if __name__ == "__main__":
    key = jax.random.PRNGKey(0)
    kx, kp = jax.random.split(key)
    x = jax.random.normal(kx, (B, C, HW, HW), jnp.float32)   # NCHW, like PyTorch
    params = init_params(kp)

    forward = jax.jit(feature_vit_forward)
    out = forward(x, params)
    out = jax.block_until_ready(out)
    assert out.shape == (B, D) and out.dtype == jnp.float32
    assert bool(jnp.all(jnp.isfinite(out)))
    print("KERNEL_OK")
</pallas_src>

<mosaic_0001>
module attributes {stable_mosaic.version = 11 : i64} {
  func.func @fused_vit_kernel(%arg0: memref<8x256xf32, #tpu.memory_space<vmem>>, %arg1: memref<256x32xf32, #tpu.memory_space<vmem>>, %arg2: memref<10x1xf32, #tpu.memory_space<vmem>>, %arg3: memref<10x8xf32, #tpu.memory_space<vmem>>, %arg4: memref<10x32xf32, #tpu.memory_space<vmem>>, %arg5: memref<10x10xf32, #tpu.memory_space<vmem>>, %arg6: memref<2x10xf32, #tpu.memory_space<vmem>>, %arg7: memref<18x32xf32, #tpu.memory_space<vmem>>, %arg8: memref<2x96xf32, #tpu.memory_space<vmem>>, %arg9: memref<2x128xf32, #tpu.memory_space<vmem>>, %arg10: memref<64x96xf32, #tpu.memory_space<vmem>>, %arg11: memref<64x32xf32, #tpu.memory_space<vmem>>, %arg12: memref<64x128xf32, #tpu.memory_space<vmem>>, %arg13: memref<256x32xf32, #tpu.memory_space<vmem>>, %arg14: memref<2x32xf32, #tpu.memory_space<vmem>>) attributes {dimension_semantics = [], scalar_prefetch = 0 : i64, scratch_operands = 0 : i64, tpu.core_type = #tpu.core_type<tc>} {
    %c0 = arith.constant 0 : index
    %c0_0 = arith.constant 0 : index
    %0 = vector.load %arg0[%c0, %c0_0] : memref<8x256xf32, #tpu.memory_space<vmem>>, vector<8x256xf32>
    %c0_1 = arith.constant 0 : index
    %c0_2 = arith.constant 0 : index
    %1 = vector.load %arg1[%c0_1, %c0_2] : memref<256x32xf32, #tpu.memory_space<vmem>>, vector<256x32xf32>
    %cst = arith.constant dense<0.000000e+00> : vector<8x32xf32>
    %2 = tpu.matmul %0, %1, %cst {dimension_numbers = #tpu.dot_dimension_numbers<[1], [0], [0], [1], [0, 0, 1, 1], [], []>} : vector<8x256xf32>, vector<256x32xf32>, vector<8x32xf32> -> vector<8x32xf32>
    %c0_3 = arith.constant 0 : index
    %c0_4 = arith.constant 0 : index
    %3 = vector.load %arg7[%c0_3, %c0_4] : memref<18x32xf32, #tpu.memory_space<vmem>>, vector<1x32xf32>
    %4 = vector.broadcast %3 : vector<1x32xf32> to vector<8x32xf32>
    %5 = arith.addf %2, %4 : vector<8x32xf32>
    %c0_5 = arith.constant 0 : index
    %c0_6 = arith.constant 0 : index
    %6 = vector.load %arg2[%c0_5, %c0_6] : memref<10x1xf32, #tpu.memory_space<vmem>>, vector<10x1xf32>
    %c1 = arith.constant 1 : index
    %c0_7 = arith.constant 0 : index
    %7 = vector.load %arg7[%c1, %c0_7] : memref<18x32xf32, #tpu.memory_space<vmem>>, vector<1x32xf32>
    %8 = vector.broadcast %6 : vector<10x1xf32> to vector<10x32xf32>
    %9 = vector.broadcast %7 : vector<1x32xf32> to vector<10x32xf32>
    %10 = arith.mulf %8, %9 : vector<10x32xf32>
    %c0_8 = arith.constant 0 : index
    %c0_9 = arith.constant 0 : index
    %11 = vector.load %arg3[%c0_8, %c0_9] : memref<10x8xf32, #tpu.memory_space<vmem>>, vector<10x8xf32>
    %cst_10 = arith.constant dense<0.000000e+00> : vector<10x32xf32>
    %12 = tpu.matmul %11, %5, %cst_10 {dimension_numbers = #tpu.dot_dimension_numbers<[1], [0], [0], [1], [0, 0, 1, 1], [], []>} : vector<10x8xf32>, vector<8x32xf32>, vector<10x32xf32> -> vector<10x32xf32>
    %13 = arith.addf %10, %12 : vector<10x32xf32>
    %c0_11 = arith.constant 0 : index
    %c0_12 = arith.constant 0 : index
    %14 = vector.load %arg4[%c0_11, %c0_12] : memref<10x32xf32, #tpu.memory_space<vmem>>, vector<10x32xf32>
    %15 = arith.addf %13, %14 : vector<10x32xf32>
    %c0_13 = arith.constant 0 : index
    %c0_14 = arith.constant 0 : index
    %16 = vector.load %arg5[%c0_13, %c0_14] : memref<10x10xf32, #tpu.memory_space<vmem>>, vector<10x10xf32>
    %c6 = arith.constant 6 : index
    %c0_15 = arith.constant 0 : index
    %17 = vector.load %arg7[%c6, %c0_15] : memref<18x32xf32, #tpu.memory_space<vmem>>, vector<1x32xf32>
    %c7 = arith.constant 7 : index
    %c0_16 = arith.constant 0 : index
    %18 = vector.load %arg7[%c7, %c0_16] : memref<18x32xf32, #tpu.memory_space<vmem>>, vector<1x32xf32>
    %c8 = arith.constant 8 : index
    %c0_17 = arith.constant 0 : index
    %19 = vector.load %arg7[%c8, %c0_17] : memref<18x32xf32, #tpu.memory_space<vmem>>, vector<1x32xf32>
    %c9 = arith.constant 9 : index
    %c0_18 = arith.constant 0 : index
    %20 = vector.load %arg7[%c9, %c0_18] : memref<18x32xf32, #tpu.memory_space<vmem>>, vector<1x32xf32>
    %c10 = arith.constant 10 : index
    %c0_19 = arith.constant 0 : index
    %21 = vector.load %arg7[%c10, %c0_19] : memref<18x32xf32, #tpu.memory_space<vmem>>, vector<1x32xf32>
    %c11 = arith.constant 11 : index
    %c0_20 = arith.constant 0 : index
    %22 = vector.load %arg7[%c11, %c0_20] : memref<18x32xf32, #tpu.memory_space<vmem>>, vector<1x32xf32>
    %c0_21 = arith.constant 0 : index
    %c0_22 = arith.constant 0 : index
    %23 = vector.load %arg10[%c0_21, %c0_22] : memref<64x96xf32, #tpu.memory_space<vmem>>, vector<32x96xf32>
    %c0_23 = arith.constant 0 : index
    %c0_24 = arith.constant 0 : index
    %24 = vector.load %arg11[%c0_23, %c0_24] : memref<64x32xf32, #tpu.memory_space<vmem>>, vector<32x32xf32>
    %c0_25 = arith.constant 0 : index
    %c0_26 = arith.constant 0 : index
    %25 = vector.load %arg12[%c0_25, %c0_26] : memref<64x128xf32, #tpu.memory_space<vmem>>, vector<32x128xf32>
    %c0_27 = arith.constant 0 : index
    %c0_28 = arith.constant 0 : index
    %26 = vector.load %arg13[%c0_27, %c0_28] : memref<256x32xf32, #tpu.memory_space<vmem>>, vector<128x32xf32>
    %c0_29 = arith.constant 0 : index
    %c0_30 = arith.constant 0 : index
    %27 = vector.load %arg8[%c0_29, %c0_30] : memref<2x96xf32, #tpu.memory_space<vmem>>, vector<1x96xf32>
    %c0_31 = arith.constant 0 : index
    %c0_32 = arith.constant 0 : index
    %28 = vector.load %arg9[%c0_31, %c0_32] : memref<2x128xf32, #tpu.memory_space<vmem>>, vector<1x128xf32>
    %cst_33 = arith.constant dense<0.000000e+00> : vector<10xf32>
    %29 = vector.multi_reduction <add>, %15, %cst_33 [1] : vector<10x32xf32> to vector<10xf32>
    %30 = vector.shape_cast %29 : vector<10xf32> to vector<10x1xf32>
    %cst_34 = arith.constant 3.200000e+01 : f32
    %31 = vector.broadcast %cst_34 : f32 to vector<10x1xf32>
    %32 = arith.divf %30, %31 : vector<10x1xf32>
    %33 = vector.broadcast %32 : vector<10x1xf32> to vector<10x32xf32>
    %34 = arith.subf %15, %33 : vector<10x32xf32>
    %35 = arith.mulf %34, %34 : vector<10x32xf32>
    %cst_35 = arith.constant dense<0.000000e+00> : vector<10xf32>
    %36 = vector.multi_reduction <add>, %35, %cst_35 [1] : vector<10x32xf32> to vector<10xf32>
    %37 = vector.shape_cast %36 : vector<10xf32> to vector<10x1xf32>
    %cst_36 = arith.constant 3.200000e+01 : f32
    %38 = vector.broadcast %cst_36 : f32 to vector<10x1xf32>
    %39 = arith.divf %37, %38 : vector<10x1xf32>
    %40 = vector.broadcast %32 : vector<10x1xf32> to vector<10x32xf32>
    %41 = arith.subf %15, %40 : vector<10x32xf32>
    %cst_37 = arith.constant 9.99999997E-7 : f32
    %42 = vector.broadcast %cst_37 : f32 to vector<10x1xf32>
    %43 = arith.addf %39, %42 : vector<10x1xf32>
    %44 = math.rsqrt %43 : vector<10x1xf32>
    %45 = vector.broadcast %44 : vector<10x1xf32> to vector<10x32xf32>
    %46 = arith.mulf %41, %45 : vector<10x32xf32>
    %47 = vector.broadcast %17 : vector<1x32xf32> to vector<10x32xf32>
    %48 = arith.mulf %46, %47 : vector<10x32xf32>
    %49 = vector.broadcast %18 : vector<1x32xf32> to vector<10x32xf32>
    %50 = arith.addf %48, %49 : vector<10x32xf32>
    %cst_38 = arith.constant dense<0.000000e+00> : vector<10x96xf32>
    %51 = tpu.matmul %50, %23, %cst_38 {dimension_numbers = #tpu.dot_dimension_numbers<[1], [0], [0], [1], [0, 0, 1, 1], [], []>} : vector<10x32xf32>, vector<32x96xf32>, vector<10x96xf32> -> vector<10x96xf32>
    %52 = vector.broadcast %27 : vector<1x96xf32> to vector<10x96xf32>
    %53 = arith.addf %51, %52 : vector<10x96xf32>
    %54 = vector.extract_strided_slice %53 {offsets = [0, 0], sizes = [10, 32], strides = [1, 1]} : vector<10x96xf32> to vector<10x32xf32>
    %cst_39 = arith.constant 0.353553385 : f32
    %55 = vector.broadcast %cst_39 : f32 to vector<10x32xf32>
    %56 = arith.mulf %54, %55 : vector<10x32xf32>
    %57 = vector.extract_strided_slice %53 {offsets = [0, 32], sizes = [10, 32], strides = [1, 1]} : vector<10x96xf32> to vector<10x32xf32>
    %58 = vector.extract_strided_slice %53 {offsets = [0, 64], sizes = [10, 32], strides = [1, 1]} : vector<10x96xf32> to vector<10x32xf32>
    %59 = vector.extract_strided_slice %56 {offsets = [0, 0], sizes = [10, 8], strides = [1, 1]} : vector<10x32xf32> to vector<10x8xf32>
    %60 = vector.extract_strided_slice %57 {offsets = [0, 0], sizes = [10, 8], strides = [1, 1]} : vector<10x32xf32> to vector<10x8xf32>
    %cst_40 = arith.constant dense<0.000000e+00> : vector<10x10xf32>
    %61 = tpu.matmul %59, %60, %cst_40 {dimension_numbers = #tpu.dot_dimension_numbers<[1], [1], [0], [0], [0, 0, 1, 0], [], []>} : vector<10x8xf32>, vector<10x8xf32>, vector<10x10xf32> -> vector<10x10xf32>
    %62 = arith.addf %61, %16 : vector<10x10xf32>
    %cst_41 = arith.constant dense<0xFF800000> : vector<10xf32>
    %63 = vector.multi_reduction <maximumf>, %62, %cst_41 [1] : vector<10x10xf32> to vector<10xf32>
    %64 = vector.shape_cast %63 : vector<10xf32> to vector<10x1xf32>
    %65 = vector.broadcast %64 : vector<10x1xf32> to vector<10x10xf32>
    %66 = arith.subf %62, %65 : vector<10x10xf32>
    %67 = math.exp %66 : vector<10x10xf32>
    %cst_42 = arith.constant dense<0.000000e+00> : vector<10xf32>
    %68 = vector.multi_reduction <add>, %67, %cst_42 [1] : vector<10x10xf32> to vector<10xf32>
    %69 = vector.shape_cast %68 : vector<10xf32> to vector<10x1xf32>
    %70 = tpu.reciprocal %69 {approx = true} : vector<10x1xf32> -> vector<10x1xf32>
    %71 = vector.broadcast %70 : vector<10x1xf32> to vector<10x10xf32>
    %72 = arith.mulf %67, %71 : vector<10x10xf32>
    %73 = vector.extract_strided_slice %58 {offsets = [0, 0], sizes = [10, 8], strides = [1, 1]} : vector<10x32xf32> to vector<10x8xf32>
    %cst_43 = arith.constant dense<0.000000e+00> : vector<10x8xf32>
    %74 = tpu.matmul %72, %73, %cst_43 {dimension_numbers = #tpu.dot_dimension_numbers<[1], [0], [0], [1], [0, 0, 1, 1], [], []>} : vector<10x10xf32>, vector<10x8xf32>, vector<10x8xf32> -> vector<10x8xf32>
    %75 = vector.extract_strided_slice %24 {offsets = [0, 0], sizes = [8, 32], strides = [1, 1]} : vector<32x32xf32> to vector<8x32xf32>
    %cst_44 = arith.constant dense<0.000000e+00> : vector<10x32xf32>
    %76 = tpu.matmul %74, %75, %cst_44 {dimension_numbers = #tpu.dot_dimension_numbers<[1], [0], [0], [1], [0, 0, 1, 1], [], []>} : vector<10x8xf32>, vector<8x32xf32>, vector<10x32xf32> -> vector<10x32xf32>
    %77 = vector.broadcast %19 : vector<1x32xf32> to vector<10x32xf32>
    %78 = arith.addf %77, %76 : vector<10x32xf32>
    %79 = vector.extract_strided_slice %56 {offsets = [0, 8], sizes = [10, 8], strides = [1, 1]} : vector<10x32xf32> to vector<10x8xf32>
    %80 = vector.extract_strided_slice %57 {offsets = [0, 8], sizes = [10, 8], strides = [1, 1]} : vector<10x32xf32> to vector<10x8xf32>
    %cst_45 = arith.constant dense<0.000000e+00> : vector<10x10xf32>
    %81 = tpu.matmul %79, %80, %cst_45 {dimension_numbers = #tpu.dot_dimension_numbers<[1], [1], [0], [0], [0, 0, 1, 0], [], []>} : vector<10x8xf32>, vector<10x8xf32>, vector<10x10xf32> -> vector<10x10xf32>
    %82 = arith.addf %81, %16 : vector<10x10xf32>
    %cst_46 = arith.constant dense<0xFF800000> : vector<10xf32>
    %83 = vector.multi_reduction <maximumf>, %82, %cst_46 [1] : vector<10x10xf32> to vector<10xf32>
    %84 = vector.shape_cast %83 : vector<10xf32> to vector<10x1xf32>
    %85 = vector.broadcast %84 : vector<10x1xf32> to vector<10x10xf32>
    %86 = arith.subf %82, %85 : vector<10x10xf32>
    %87 = math.exp %86 : vector<10x10xf32>
    %cst_47 = arith.constant dense<0.000000e+00> : vector<10xf32>
    %88 = vector.multi_reduction <add>, %87, %cst_47 [1] : vector<10x10xf32> to vector<10xf32>
    %89 = vector.shape_cast %88 : vector<10xf32> to vector<10x1xf32>
    %90 = tpu.reciprocal %89 {approx = true} : vector<10x1xf32> -> vector<10x1xf32>
    %91 = vector.broadcast %90 : vector<10x1xf32> to vector<10x10xf32>
    %92 = arith.mulf %87, %91 : vector<10x10xf32>
    %93 = vector.extract_strided_slice %58 {offsets = [0, 8], sizes = [10, 8], strides = [1, 1]} : vector<10x32xf32> to vector<10x8xf32>
    %cst_48 = arith.constant dense<0.000000e+00> : vector<10x8xf32>
    %94 = tpu.matmul %92, %93, %cst_48 {dimension_numbers = #tpu.dot_dimension_numbers<[1], [0], [0], [1], [0, 0, 1, 1], [], []>} : vector<10x10xf32>, vector<10x8xf32>, vector<10x8xf32> -> vector<10x8xf32>
    %95 = vector.extract_strided_slice %24 {offsets = [8, 0], sizes = [8, 32], strides = [1, 1]} : vector<32x32xf32> to vector<8x32xf32>
    %cst_49 = arith.constant dense<0.000000e+00> : vector<10x32xf32>
    %96 = tpu.matmul %94, %95, %cst_49 {dimension_numbers = #tpu.dot_dimension_numbers<[1], [0], [0], [1], [0, 0, 1, 1], [], []>} : vector<10x8xf32>, vector<8x32xf32>, vector<10x32xf32> -> vector<10x32xf32>
    %97 = arith.addf %78, %96 : vector<10x32xf32>
    %98 = vector.extract_strided_slice %56 {offsets = [0, 16], sizes = [10, 8], strides = [1, 1]} : vector<10x32xf32> to vector<10x8xf32>
    %99 = vector.extract_strided_slice %57 {offsets = [0, 16], sizes = [10, 8], strides = [1, 1]} : vector<10x32xf32> to vector<10x8xf32>
    %cst_50 = arith.constant dense<0.000000e+00> : vector<10x10xf32>
    %100 = tpu.matmul %98, %99, %cst_50 {dimension_numbers = #tpu.dot_dimension_numbers<[1], [1], [0], [0], [0, 0, 1, 0], [], []>} : vector<10x8xf32>, vector<10x8xf32>, vector<10x10xf32> -> vector<10x10xf32>
    %101 = arith.addf %100, %16 : vector<10x10xf32>
    %cst_51 = arith.constant dense<0xFF800000> : vector<10xf32>
    %102 = vector.multi_reduction <maximumf>, %101, %cst_51 [1] : vector<10x10xf32> to vector<10xf32>
    %103 = vector.shape_cast %102 : vector<10xf32> to vector<10x1xf32>
    %104 = vector.broadcast %103 : vector<10x1xf32> to vector<10x10xf32>
    %105 = arith.subf %101, %104 : vector<10x10xf32>
    %106 = math.exp %105 : vector<10x10xf32>
    %cst_52 = arith.constant dense<0.000000e+00> : vector<10xf32>
    %107 = vector.multi_reduction <add>, %106, %cst_52 [1] : vector<10x10xf32> to vector<10xf32>
    %108 = vector.shape_cast %107 : vector<10xf32> to vector<10x1xf32>
    %109 = tpu.reciprocal %108 {approx = true} : vector<10x1xf32> -> vector<10x1xf32>
    %110 = vector.broadcast %109 : vector<10x1xf32> to vector<10x10xf32>
    %111 = arith.mulf %106, %110 : vector<10x10xf32>
    %112 = vector.extract_strided_slice %58 {offsets = [0, 16], sizes = [10, 8], strides = [1, 1]} : vector<10x32xf32> to vector<10x8xf32>
    %cst_53 = arith.constant dense<0.000000e+00> : vector<10x8xf32>
    %113 = tpu.matmul %111, %112, %cst_53 {dimension_numbers = #tpu.dot_dimension_numbers<[1], [0], [0], [1], [0, 0, 1, 1], [], []>} : vector<10x10xf32>, vector<10x8xf32>, vector<10x8xf32> -> vector<10x8xf32>
    %114 = vector.extract_strided_slice %24 {offsets = [16, 0], sizes = [8, 32], strides = [1, 1]} : vector<32x32xf32> to vector<8x32xf32>
    %cst_54 = arith.constant dense<0.000000e+00> : vector<10x32xf32>
    %115 = tpu.matmul %113, %114, %cst_54 {dimension_numbers = #tpu.dot_dimension_numbers<[1], [0], [0], [1], [0, 0, 1, 1], [], []>} : vector<10x8xf32>, vector<8x32xf32>, vector<10x32xf32> -> vector<10x32xf32>
    %116 = arith.addf %97, %115 : vector<10x32xf32>
    %117 = vector.extract_strided_slice %56 {offsets = [0, 24], sizes = [10, 8], strides = [1, 1]} : vector<10x32xf32> to vector<10x8xf32>
    %118 = vector.extract_strided_slice %57 {offsets = [0, 24], sizes = [10, 8], strides = [1, 1]} : vector<10x32xf32> to vector<10x8xf32>
    %cst_55 = arith.constant dense<0.000000e+00> : vector<10x10xf32>
    %119 = tpu.matmul %117, %118, %cst_55 {dimension_numbers = #tpu.dot_dimension_numbers<[1], [1], [0], [0], [0, 0, 1, 0], [], []>} : vector<10x8xf32>, vector<10x8xf32>, vector<10x10xf32> -> vector<10x10xf32>
    %120 = arith.addf %119, %16 : vector<10x10xf32>
    %cst_56 = arith.constant dense<0xFF800000> : vector<10xf32>
    %121 = vector.multi_reduction <maximumf>, %120, %cst_56 [1] : vector<10x10xf32> to vector<10xf32>
    %122 = vector.shape_cast %121 : vector<10xf32> to vector<10x1xf32>
    %123 = vector.broadcast %122 : vector<10x1xf32> to vector<10x10xf32>
    %124 = arith.subf %120, %123 : vector<10x10xf32>
    %125 = math.exp %124 : vector<10x10xf32>
    %cst_57 = arith.constant dense<0.000000e+00> : vector<10xf32>
    %126 = vector.multi_reduction <add>, %125, %cst_57 [1] : vector<10x10xf32> to vector<10xf32>
    %127 = vector.shape_cast %126 : vector<10xf32> to vector<10x1xf32>
    %128 = tpu.reciprocal %127 {approx = true} : vector<10x1xf32> -> vector<10x1xf32>
    %129 = vector.broadcast %128 : vector<10x1xf32> to vector<10x10xf32>
    %130 = arith.mulf %125, %129 : vector<10x10xf32>
    %131 = vector.extract_strided_slice %58 {offsets = [0, 24], sizes = [10, 8], strides = [1, 1]} : vector<10x32xf32> to vector<10x8xf32>
    %cst_58 = arith.constant dense<0.000000e+00> : vector<10x8xf32>
    %132 = tpu.matmul %130, %131, %cst_58 {dimension_numbers = #tpu.dot_dimension_numbers<[1], [0], [0], [1], [0, 0, 1, 1], [], []>} : vector<10x10xf32>, vector<10x8xf32>, vector<10x8xf32> -> vector<10x8xf32>
    %133 = vector.extract_strided_slice %24 {offsets = [24, 0], sizes = [8, 32], strides = [1, 1]} : vector<32x32xf32> to vector<8x32xf32>
    %cst_59 = arith.constant dense<0.000000e+00> : vector<10x32xf32>
    %134 = tpu.matmul %132, %133, %cst_59 {dimension_numbers = #tpu.dot_dimension_numbers<[1], [0], [0], [1], [0, 0, 1, 1], [], []>} : vector<10x8xf32>, vector<8x32xf32>, vector<10x32xf32> -> vector<10x32xf32>
    %135 = arith.addf %116, %134 : vector<10x32xf32>
    %136 = arith.addf %15, %135 : vector<10x32xf32>
    %cst_60 = arith.constant dense<0.000000e+00> : vector<10xf32>
    %137 = vector.multi_reduction <add>, %136, %cst_60 [1] : vector<10x32xf32> to vector<10xf32>
    %138 = vector.shape_cast %137 : vector<10xf32> to vector<10x1xf32>
    %cst_61 = arith.constant 3.200000e+01 : f32
    %139 = vector.broadcast %cst_61 : f32 to vector<10x1xf32>
    %140 = arith.divf %138, %139 : vector<10x1xf32>
    %141 = vector.broadcast %140 : vector<10x1xf32> to vector<10x32xf32>
    %142 = arith.subf %136, %141 : vector<10x32xf32>
    %143 = arith.mulf %142, %142 : vector<10x32xf32>
    %cst_62 = arith.constant dense<0.000000e+00> : vector<10xf32>
    %144 = vector.multi_reduction <add>, %143, %cst_62 [1] : vector<10x32xf32> to vector<10xf32>
    %145 = vector.shape_cast %144 : vector<10xf32> to vector<10x1xf32>
    %cst_63 = arith.constant 3.200000e+01 : f32
    %146 = vector.broadcast %cst_63 : f32 to vector<10x1xf32>
    %147 = arith.divf %145, %146 : vector<10x1xf32>
    %148 = vector.broadcast %140 : vector<10x1xf32> to vector<10x32xf32>
    %149 = arith.subf %136, %148 : vector<10x32xf32>
    %cst_64 = arith.constant 9.99999997E-7 : f32
    %150 = vector.broadcast %cst_64 : f32 to vector<10x1xf32>
    %151 = arith.addf %147, %150 : vector<10x1xf32>
    %152 = math.rsqrt %151 : vector<10x1xf32>
    %153 = vector.broadcast %152 : vector<10x1xf32> to vector<10x32xf32>
    %154 = arith.mulf %149, %153 : vector<10x32xf32>
    %155 = vector.broadcast %20 : vector<1x32xf32> to vector<10x32xf32>
    %156 = arith.mulf %154, %155 : vector<10x32xf32>
    %157 = vector.broadcast %21 : vector<1x32xf32> to vector<10x32xf32>
    %158 = arith.addf %156, %157 : vector<10x32xf32>
    %cst_65 = arith.constant dense<0.000000e+00> : vector<10x128xf32>
    %159 = tpu.matmul %158, %25, %cst_65 {dimension_numbers = #tpu.dot_dimension_numbers<[1], [0], [0], [1], [0, 0, 1, 1], [], []>} : vector<10x32xf32>, vector<32x128xf32>, vector<10x128xf32> -> vector<10x128xf32>
    %160 = vector.broadcast %28 : vector<1x128xf32> to vector<10x128xf32>
    %161 = arith.addf %159, %160 : vector<10x128xf32>
    %162 = arith.mulf %161, %161 : vector<10x128xf32>
    %163 = arith.mulf %161, %162 : vector<10x128xf32>
    %cst_66 = arith.constant 4.471500e-02 : f32
    %164 = vector.broadcast %cst_66 : f32 to vector<10x128xf32>
    %165 = arith.mulf %164, %163 : vector<10x128xf32>
    %166 = arith.addf %161, %165 : vector<10x128xf32>
    %cst_67 = arith.constant 0.797884583 : f32
    %167 = vector.broadcast %cst_67 : f32 to vector<10x128xf32>
    %168 = arith.mulf %167, %166 : vector<10x128xf32>
    %169 = math.tanh %168 : vector<10x128xf32>
    %cst_68 = arith.constant 1.000000e+00 : f32
    %170 = vector.broadcast %cst_68 : f32 to vector<10x128xf32>
    %171 = arith.addf %170, %169 : vector<10x128xf32>
    %cst_69 = arith.constant 5.000000e-01 : f32
    %172 = vector.broadcast %cst_69 : f32 to vector<10x128xf32>
    %173 = arith.mulf %172, %171 : vector<10x128xf32>
    %174 = arith.mulf %161, %173 : vector<10x128xf32>
    %cst_70 = arith.constant dense<0.000000e+00> : vector<10x32xf32>
    %175 = tpu.matmul %174, %26, %cst_70 {dimension_numbers = #tpu.dot_dimension_numbers<[1], [0], [0], [1], [0, 0, 1, 1], [], []>} : vector<10x128xf32>, vector<128x32xf32>, vector<10x32xf32> -> vector<10x32xf32>
    %176 = arith.addf %136, %175 : vector<10x32xf32>
    %177 = vector.broadcast %22 : vector<1x32xf32> to vector<10x32xf32>
    %178 = arith.addf %176, %177 : vector<10x32xf32>
    %c12 = arith.constant 12 : index
    %c0_71 = arith.constant 0 : index
    %179 = vector.load %arg7[%c12, %c0_71] : memref<18x32xf32, #tpu.memory_space<vmem>>, vector<1x32xf32>
    %c13 = arith.constant 13 : index
    %c0_72 = arith.constant 0 : index
    %180 = vector.load %arg7[%c13, %c0_72] : memref<18x32xf32, #tpu.memory_space<vmem>>, vector<1x32xf32>
    %c14 = arith.constant 14 : index
    %c0_73 = arith.constant 0 : index
    %181 = vector.load %arg7[%c14, %c0_73] : memref<18x32xf32, #tpu.memory_space<vmem>>, vector<1x32xf32>
    %c15 = arith.constant 15 : index
    %c0_74 = arith.constant 0 : index
    %182 = vector.load %arg7[%c15, %c0_74] : memref<18x32xf32, #tpu.memory_space<vmem>>, vector<1x32xf32>
    %c16 = arith.constant 16 : index
    %c0_75 = arith.constant 0 : index
    %183 = vector.load %arg7[%c16, %c0_75] : memref<18x32xf32, #tpu.memory_space<vmem>>, vector<1x32xf32>
    %c17 = arith.constant 17 : index
    %c0_76 = arith.constant 0 : index
    %184 = vector.load %arg7[%c17, %c0_76] : memref<18x32xf32, #tpu.memory_space<vmem>>, vector<1x32xf32>
    %c32 = arith.constant 32 : index
    %c0_77 = arith.constant 0 : index
    %185 = vector.load %arg10[%c32, %c0_77] : memref<64x96xf32, #tpu.memory_space<vmem>>, vector<32x96xf32>
    %c32_78 = arith.constant 32 : index
    %c0_79 = arith.constant 0 : index
    %186 = vector.load %arg11[%c32_78, %c0_79] : memref<64x32xf32, #tpu.memory_space<vmem>>, vector<32x32xf32>
    %c32_80 = arith.constant 32 : index
    %c0_81 = arith.constant 0 : index
    %187 = vector.load %arg12[%c32_80, %c0_81] : memref<64x128xf32, #tpu.memory_space<vmem>>, vector<32x128xf32>
    %c128 = arith.constant 128 : index
    %c0_82 = arith.constant 0 : index
    %188 = vector.load %arg13[%c128, %c0_82] : memref<256x32xf32, #tpu.memory_space<vmem>>, vector<128x32xf32>
    %c1_83 = arith.constant 1 : index
    %c0_84 = arith.constant 0 : index
    %189 = vector.load %arg8[%c1_83, %c0_84] : memref<2x96xf32, #tpu.memory_space<vmem>>, vector<1x96xf32>
    %c1_85 = arith.constant 1 : index
    %c0_86 = arith.constant 0 : index
    %190 = vector.load %arg9[%c1_85, %c0_86] : memref<2x128xf32, #tpu.memory_space<vmem>>, vector<1x128xf32>
    %cst_87 = arith.constant dense<0.000000e+00> : vector<10xf32>
    %191 = vector.multi_reduction <add>, %178, %cst_87 [1] : vector<10x32xf32> to vector<10xf32>
    %192 = vector.shape_cast %191 : vector<10xf32> to vector<10x1xf32>
    %cst_88 = arith.constant 3.200000e+01 : f32
    %193 = vector.broadcast %cst_88 : f32 to vector<10x1xf32>
    %194 = arith.divf %192, %193 : vector<10x1xf32>
    %195 = vector.broadcast %194 : vector<10x1xf32> to vector<10x32xf32>
    %196 = arith.subf %178, %195 : vector<10x32xf32>
    %197 = arith.mulf %196, %196 : vector<10x32xf32>
    %cst_89 = arith.constant dense<0.000000e+00> : vector<10xf32>
    %198 = vector.multi_reduction <add>, %197, %cst_89 [1] : vector<10x32xf32> to vector<10xf32>
    %199 = vector.shape_cast %198 : vector<10xf32> to vector<10x1xf32>
    %cst_90 = arith.constant 3.200000e+01 : f32
    %200 = vector.broadcast %cst_90 : f32 to vector<10x1xf32>
    %201 = arith.divf %199, %200 : vector<10x1xf32>
    %202 = vector.broadcast %194 : vector<10x1xf32> to vector<10x32xf32>
    %203 = arith.subf %178, %202 : vector<10x32xf32>
    %cst_91 = arith.constant 9.99999997E-7 : f32
    %204 = vector.broadcast %cst_91 : f32 to vector<10x1xf32>
    %205 = arith.addf %201, %204 : vector<10x1xf32>
    %206 = math.rsqrt %205 : vector<10x1xf32>
    %207 = vector.broadcast %206 : vector<10x1xf32> to vector<10x32xf32>
    %208 = arith.mulf %203, %207 : vector<10x32xf32>
    %209 = vector.broadcast %179 : vector<1x32xf32> to vector<10x32xf32>
    %210 = arith.mulf %208, %209 : vector<10x32xf32>
    %211 = vector.broadcast %180 : vector<1x32xf32> to vector<10x32xf32>
    %212 = arith.addf %210, %211 : vector<10x32xf32>
    %cst_92 = arith.constant dense<0.000000e+00> : vector<10x96xf32>
    %213 = tpu.matmul %212, %185, %cst_92 {dimension_numbers = #tpu.dot_dimension_numbers<[1], [0], [0], [1], [0, 0, 1, 1], [], []>} : vector<10x32xf32>, vector<32x96xf32>, vector<10x96xf32> -> vector<10x96xf32>
    %214 = vector.broadcast %189 : vector<1x96xf32> to vector<10x96xf32>
    %215 = arith.addf %213, %214 : vector<10x96xf32>
    %216 = vector.extract_strided_slice %215 {offsets = [0, 0], sizes = [10, 32], strides = [1, 1]} : vector<10x96xf32> to vector<10x32xf32>
    %cst_93 = arith.constant 0.353553385 : f32
    %217 = vector.broadcast %cst_93 : f32 to vector<10x32xf32>
    %218 = arith.mulf %216, %217 : vector<10x32xf32>
    %219 = vector.extract_strided_slice %215 {offsets = [0, 32], sizes = [10, 32], strides = [1, 1]} : vector<10x96xf32> to vector<10x32xf32>
    %220 = vector.extract_strided_slice %215 {offsets = [0, 64], sizes = [10, 32], strides = [1, 1]} : vector<10x96xf32> to vector<10x32xf32>
    %221 = vector.extract_strided_slice %218 {offsets = [0, 0], sizes = [10, 8], strides = [1, 1]} : vector<10x32xf32> to vector<10x8xf32>
    %222 = vector.extract_strided_slice %219 {offsets = [0, 0], sizes = [10, 8], strides = [1, 1]} : vector<10x32xf32> to vector<10x8xf32>
    %cst_94 = arith.constant dense<0.000000e+00> : vector<10x10xf32>
    %223 = tpu.matmul %221, %222, %cst_94 {dimension_numbers = #tpu.dot_dimension_numbers<[1], [1], [0], [0], [0, 0, 1, 0], [], []>} : vector<10x8xf32>, vector<10x8xf32>, vector<10x10xf32> -> vector<10x10xf32>
    %224 = arith.addf %223, %16 : vector<10x10xf32>
    %cst_95 = arith.constant dense<0xFF800000> : vector<10xf32>
    %225 = vector.multi_reduction <maximumf>, %224, %cst_95 [1] : vector<10x10xf32> to vector<10xf32>
    %226 = vector.shape_cast %225 : vector<10xf32> to vector<10x1xf32>
    %227 = vector.broadcast %226 : vector<10x1xf32> to vector<10x10xf32>
    %228 = arith.subf %224, %227 : vector<10x10xf32>
    %229 = math.exp %228 : vector<10x10xf32>
    %cst_96 = arith.constant dense<0.000000e+00> : vector<10xf32>
    %230 = vector.multi_reduction <add>, %229, %cst_96 [1] : vector<10x10xf32> to vector<10xf32>
    %231 = vector.shape_cast %230 : vector<10xf32> to vector<10x1xf32>
    %232 = tpu.reciprocal %231 {approx = true} : vector<10x1xf32> -> vector<10x1xf32>
    %233 = vector.broadcast %232 : vector<10x1xf32> to vector<10x10xf32>
    %234 = arith.mulf %229, %233 : vector<10x10xf32>
    %235 = vector.extract_strided_slice %220 {offsets = [0, 0], sizes = [10, 8], strides = [1, 1]} : vector<10x32xf32> to vector<10x8xf32>
    %cst_97 = arith.constant dense<0.000000e+00> : vector<10x8xf32>
    %236 = tpu.matmul %234, %235, %cst_97 {dimension_numbers = #tpu.dot_dimension_numbers<[1], [0], [0], [1], [0, 0, 1, 1], [], []>} : vector<10x10xf32>, vector<10x8xf32>, vector<10x8xf32> -> vector<10x8xf32>
    %237 = vector.extract_strided_slice %186 {offsets = [0, 0], sizes = [8, 32], strides = [1, 1]} : vector<32x32xf32> to vector<8x32xf32>
    %cst_98 = arith.constant dense<0.000000e+00> : vector<10x32xf32>
    %238 = tpu.matmul %236, %237, %cst_98 {dimension_numbers = #tpu.dot_dimension_numbers<[1], [0], [0], [1], [0, 0, 1, 1], [], []>} : vector<10x8xf32>, vector<8x32xf32>, vector<10x32xf32> -> vector<10x32xf32>
    %239 = vector.broadcast %181 : vector<1x32xf32> to vector<10x32xf32>
    %240 = arith.addf %239, %238 : vector<10x32xf32>
    %241 = vector.extract_strided_slice %218 {offsets = [0, 8], sizes = [10, 8], strides = [1, 1]} : vector<10x32xf32> to vector<10x8xf32>
    %242 = vector.extract_strided_slice %219 {offsets = [0, 8], sizes = [10, 8], strides = [1, 1]} : vector<10x32xf32> to vector<10x8xf32>
    %cst_99 = arith.constant dense<0.000000e+00> : vector<10x10xf32>
    %243 = tpu.matmul %241, %242, %cst_99 {dimension_numbers = #tpu.dot_dimension_numbers<[1], [1], [0], [0], [0, 0, 1, 0], [], []>} : vector<10x8xf32>, vector<10x8xf32>, vector<10x10xf32> -> vector<10x10xf32>
    %244 = arith.addf %243, %16 : vector<10x10xf32>
    %cst_100 = arith.constant dense<0xFF800000> : vector<10xf32>
    %245 = vector.multi_reduction <maximumf>, %244, %cst_100 [1] : vector<10x10xf32> to vector<10xf32>
    %246 = vector.shape_cast %245 : vector<10xf32> to vector<10x1xf32>
    %247 = vector.broadcast %246 : vector<10x1xf32> to vector<10x10xf32>
    %248 = arith.subf %244, %247 : vector<10x10xf32>
    %249 = math.exp %248 : vector<10x10xf32>
    %cst_101 = arith.constant dense<0.000000e+00> : vector<10xf32>
    %250 = vector.multi_reduction <add>, %249, %cst_101 [1] : vector<10x10xf32> to vector<10xf32>
    %251 = vector.shape_cast %250 : vector<10xf32> to vector<10x1xf32>
    %252 = tpu.reciprocal %251 {approx = true} : vector<10x1xf32> -> vector<10x1xf32>
    %253 = vector.broadcast %252 : vector<10x1xf32> to vector<10x10xf32>
    %254 = arith.mulf %249, %253 : vector<10x10xf32>
    %255 = vector.extract_strided_slice %220 {offsets = [0, 8], sizes = [10, 8], strides = [1, 1]} : vector<10x32xf32> to vector<10x8xf32>
    %cst_102 = arith.constant dense<0.000000e+00> : vector<10x8xf32>
    %256 = tpu.matmul %254, %255, %cst_102 {dimension_numbers = #tpu.dot_dimension_numbers<[1], [0], [0], [1], [0, 0, 1, 1], [], []>} : vector<10x10xf32>, vector<10x8xf32>, vector<10x8xf32> -> vector<10x8xf32>
    %257 = vector.extract_strided_slice %186 {offsets = [8, 0], sizes = [8, 32], strides = [1, 1]} : vector<32x32xf32> to vector<8x32xf32>
    %cst_103 = arith.constant dense<0.000000e+00> : vector<10x32xf32>
    %258 = tpu.matmul %256, %257, %cst_103 {dimension_numbers = #tpu.dot_dimension_numbers<[1], [0], [0], [1], [0, 0, 1, 1], [], []>} : vector<10x8xf32>, vector<8x32xf32>, vector<10x32xf32> -> vector<10x32xf32>
    %259 = arith.addf %240, %258 : vector<10x32xf32>
    %260 = vector.extract_strided_slice %218 {offsets = [0, 16], sizes = [10, 8], strides = [1, 1]} : vector<10x32xf32> to vector<10x8xf32>
    %261 = vector.extract_strided_slice %219 {offsets = [0, 16], sizes = [10, 8], strides = [1, 1]} : vector<10x32xf32> to vector<10x8xf32>
    %cst_104 = arith.constant dense<0.000000e+00> : vector<10x10xf32>
    %262 = tpu.matmul %260, %261, %cst_104 {dimension_numbers = #tpu.dot_dimension_numbers<[1], [1], [0], [0], [0, 0, 1, 0], [], []>} : vector<10x8xf32>, vector<10x8xf32>, vector<10x10xf32> -> vector<10x10xf32>
    %263 = arith.addf %262, %16 : vector<10x10xf32>
    %cst_105 = arith.constant dense<0xFF800000> : vector<10xf32>
    %264 = vector.multi_reduction <maximumf>, %263, %cst_105 [1] : vector<10x10xf32> to vector<10xf32>
    %265 = vector.shape_cast %264 : vector<10xf32> to vector<10x1xf32>
    %266 = vector.broadcast %265 : vector<10x1xf32> to vector<10x10xf32>
    %267 = arith.subf %263, %266 : vector<10x10xf32>
    %268 = math.exp %267 : vector<10x10xf32>
    %cst_106 = arith.constant dense<0.000000e+00> : vector<10xf32>
    %269 = vector.multi_reduction <add>, %268, %cst_106 [1] : vector<10x10xf32> to vector<10xf32>
    %270 = vector.shape_cast %269 : vector<10xf32> to vector<10x1xf32>
    %271 = tpu.reciprocal %270 {approx = true} : vector<10x1xf32> -> vector<10x1xf32>
    %272 = vector.broadcast %271 : vector<10x1xf32> to vector<10x10xf32>
    %273 = arith.mulf %268, %272 : vector<10x10xf32>
    %274 = vector.extract_strided_slice %220 {offsets = [0, 16], sizes = [10, 8], strides = [1, 1]} : vector<10x32xf32> to vector<10x8xf32>
    %cst_107 = arith.constant dense<0.000000e+00> : vector<10x8xf32>
    %275 = tpu.matmul %273, %274, %cst_107 {dimension_numbers = #tpu.dot_dimension_numbers<[1], [0], [0], [1], [0, 0, 1, 1], [], []>} : vector<10x10xf32>, vector<10x8xf32>, vector<10x8xf32> -> vector<10x8xf32>
    %276 = vector.extract_strided_slice %186 {offsets = [16, 0], sizes = [8, 32], strides = [1, 1]} : vector<32x32xf32> to vector<8x32xf32>
    %cst_108 = arith.constant dense<0.000000e+00> : vector<10x32xf32>
    %277 = tpu.matmul %275, %276, %cst_108 {dimension_numbers = #tpu.dot_dimension_numbers<[1], [0], [0], [1], [0, 0, 1, 1], [], []>} : vector<10x8xf32>, vector<8x32xf32>, vector<10x32xf32> -> vector<10x32xf32>
    %278 = arith.addf %259, %277 : vector<10x32xf32>
    %279 = vector.extract_strided_slice %218 {offsets = [0, 24], sizes = [10, 8], strides = [1, 1]} : vector<10x32xf32> to vector<10x8xf32>
    %280 = vector.extract_strided_slice %219 {offsets = [0, 24], sizes = [10, 8], strides = [1, 1]} : vector<10x32xf32> to vector<10x8xf32>
    %cst_109 = arith.constant dense<0.000000e+00> : vector<10x10xf32>
    %281 = tpu.matmul %279, %280, %cst_109 {dimension_numbers = #tpu.dot_dimension_numbers<[1], [1], [0], [0], [0, 0, 1, 0], [], []>} : vector<10x8xf32>, vector<10x8xf32>, vector<10x10xf32> -> vector<10x10xf32>
    %282 = arith.addf %281, %16 : vector<10x10xf32>
    %cst_110 = arith.constant dense<0xFF800000> : vector<10xf32>
    %283 = vector.multi_reduction <maximumf>, %282, %cst_110 [1] : vector<10x10xf32> to vector<10xf32>
    %284 = vector.shape_cast %283 : vector<10xf32> to vector<10x1xf32>
    %285 = vector.broadcast %284 : vector<10x1xf32> to vector<10x10xf32>
    %286 = arith.subf %282, %285 : vector<10x10xf32>
    %287 = math.exp %286 : vector<10x10xf32>
    %cst_111 = arith.constant dense<0.000000e+00> : vector<10xf32>
    %288 = vector.multi_reduction <add>, %287, %cst_111 [1] : vector<10x10xf32> to vector<10xf32>
    %289 = vector.shape_cast %288 : vector<10xf32> to vector<10x1xf32>
    %290 = tpu.reciprocal %289 {approx = true} : vector<10x1xf32> -> vector<10x1xf32>
    %291 = vector.broadcast %290 : vector<10x1xf32> to vector<10x10xf32>
    %292 = arith.mulf %287, %291 : vector<10x10xf32>
    %293 = vector.extract_strided_slice %220 {offsets = [0, 24], sizes = [10, 8], strides = [1, 1]} : vector<10x32xf32> to vector<10x8xf32>
    %cst_112 = arith.constant dense<0.000000e+00> : vector<10x8xf32>
    %294 = tpu.matmul %292, %293, %cst_112 {dimension_numbers = #tpu.dot_dimension_numbers<[1], [0], [0], [1], [0, 0, 1, 1], [], []>} : vector<10x10xf32>, vector<10x8xf32>, vector<10x8xf32> -> vector<10x8xf32>
    %295 = vector.extract_strided_slice %186 {offsets = [24, 0], sizes = [8, 32], strides = [1, 1]} : vector<32x32xf32> to vector<8x32xf32>
    %cst_113 = arith.constant dense<0.000000e+00> : vector<10x32xf32>
    %296 = tpu.matmul %294, %295, %cst_113 {dimension_numbers = #tpu.dot_dimension_numbers<[1], [0], [0], [1], [0, 0, 1, 1], [], []>} : vector<10x8xf32>, vector<8x32xf32>, vector<10x32xf32> -> vector<10x32xf32>
    %297 = arith.addf %278, %296 : vector<10x32xf32>
    %298 = arith.addf %178, %297 : vector<10x32xf32>
    %cst_114 = arith.constant dense<0.000000e+00> : vector<10xf32>
    %299 = vector.multi_reduction <add>, %298, %cst_114 [1] : vector<10x32xf32> to vector<10xf32>
    %300 = vector.shape_cast %299 : vector<10xf32> to vector<10x1xf32>
    %cst_115 = arith.constant 3.200000e+01 : f32
    %301 = vector.broadcast %cst_115 : f32 to vector<10x1xf32>
    %302 = arith.divf %300, %301 : vector<10x1xf32>
    %303 = vector.broadcast %302 : vector<10x1xf32> to vector<10x32xf32>
    %304 = arith.subf %298, %303 : vector<10x32xf32>
    %305 = arith.mulf %304, %304 : vector<10x32xf32>
    %cst_116 = arith.constant dense<0.000000e+00> : vector<10xf32>
    %306 = vector.multi_reduction <add>, %305, %cst_116 [1] : vector<10x32xf32> to vector<10xf32>
    %307 = vector.shape_cast %306 : vector<10xf32> to vector<10x1xf32>
    %cst_117 = arith.constant 3.200000e+01 : f32
    %308 = vector.broadcast %cst_117 : f32 to vector<10x1xf32>
    %309 = arith.divf %307, %308 : vector<10x1xf32>
    %310 = vector.broadcast %302 : vector<10x1xf32> to vector<10x32xf32>
    %311 = arith.subf %298, %310 : vector<10x32xf32>
    %cst_118 = arith.constant 9.99999997E-7 : f32
    %312 = vector.broadcast %cst_118 : f32 to vector<10x1xf32>
    %313 = arith.addf %309, %312 : vector<10x1xf32>
    %314 = math.rsqrt %313 : vector<10x1xf32>
    %315 = vector.broadcast %314 : vector<10x1xf32> to vector<10x32xf32>
    %316 = arith.mulf %311, %315 : vector<10x32xf32>
    %317 = vector.broadcast %182 : vector<1x32xf32> to vector<10x32xf32>
    %318 = arith.mulf %316, %317 : vector<10x32xf32>
    %319 = vector.broadcast %183 : vector<1x32xf32> to vector<10x32xf32>
    %320 = arith.addf %318, %319 : vector<10x32xf32>
    %cst_119 = arith.constant dense<0.000000e+00> : vector<10x128xf32>
    %321 = tpu.matmul %320, %187, %cst_119 {dimension_numbers = #tpu.dot_dimension_numbers<[1], [0], [0], [1], [0, 0, 1, 1], [], []>} : vector<10x32xf32>, vector<32x128xf32>, vector<10x128xf32> -> vector<10x128xf32>
    %322 = vector.broadcast %190 : vector<1x128xf32> to vector<10x128xf32>
    %323 = arith.addf %321, %322 : vector<10x128xf32>
    %324 = arith.mulf %323, %323 : vector<10x128xf32>
    %325 = arith.mulf %323, %324 : vector<10x128xf32>
    %cst_120 = arith.constant 4.471500e-02 : f32
    %326 = vector.broadcast %cst_120 : f32 to vector<10x128xf32>
    %327 = arith.mulf %326, %325 : vector<10x128xf32>
    %328 = arith.addf %323, %327 : vector<10x128xf32>
    %cst_121 = arith.constant 0.797884583 : f32
    %329 = vector.broadcast %cst_121 : f32 to vector<10x128xf32>
    %330 = arith.mulf %329, %328 : vector<10x128xf32>
    %331 = math.tanh %330 : vector<10x128xf32>
    %cst_122 = arith.constant 1.000000e+00 : f32
    %332 = vector.broadcast %cst_122 : f32 to vector<10x128xf32>
    %333 = arith.addf %332, %331 : vector<10x128xf32>
    %cst_123 = arith.constant 5.000000e-01 : f32
    %334 = vector.broadcast %cst_123 : f32 to vector<10x128xf32>
    %335 = arith.mulf %334, %333 : vector<10x128xf32>
    %336 = arith.mulf %323, %335 : vector<10x128xf32>
    %cst_124 = arith.constant dense<0.000000e+00> : vector<10x32xf32>
    %337 = tpu.matmul %336, %188, %cst_124 {dimension_numbers = #tpu.dot_dimension_numbers<[1], [0], [0], [1], [0, 0, 1, 1], [], []>} : vector<10x128xf32>, vector<128x32xf32>, vector<10x32xf32> -> vector<10x32xf32>
    %338 = arith.addf %298, %337 : vector<10x32xf32>
    %339 = vector.broadcast %184 : vector<1x32xf32> to vector<10x32xf32>
    %340 = arith.addf %338, %339 : vector<10x32xf32>
    %c2 = arith.constant 2 : index
    %c0_125 = arith.constant 0 : index
    %341 = vector.load %arg7[%c2, %c0_125] : memref<18x32xf32, #tpu.memory_space<vmem>>, vector<1x32xf32>
    %c3 = arith.constant 3 : index
    %c0_126 = arith.constant 0 : index
    %342 = vector.load %arg7[%c3, %c0_126] : memref<18x32xf32, #tpu.memory_space<vmem>>, vector<1x32xf32>
    %cst_127 = arith.constant dense<0.000000e+00> : vector<10xf32>
    %343 = vector.multi_reduction <add>, %340, %cst_127 [1] : vector<10x32xf32> to vector<10xf32>
    %344 = vector.shape_cast %343 : vector<10xf32> to vector<10x1xf32>
    %cst_128 = arith.constant 3.200000e+01 : f32
    %345 = vector.broadcast %cst_128 : f32 to vector<10x1xf32>
    %346 = arith.divf %344, %345 : vector<10x1xf32>
    %347 = vector.broadcast %346 : vector<10x1xf32> to vector<10x32xf32>
    %348 = arith.subf %340, %347 : vector<10x32xf32>
    %349 = arith.mulf %348, %348 : vector<10x32xf32>
    %cst_129 = arith.constant dense<0.000000e+00> : vector<10xf32>
    %350 = vector.multi_reduction <add>, %349, %cst_129 [1] : vector<10x32xf32> to vector<10xf32>
    %351 = vector.shape_cast %350 : vector<10xf32> to vector<10x1xf32>
    %cst_130 = arith.constant 3.200000e+01 : f32
    %352 = vector.broadcast %cst_130 : f32 to vector<10x1xf32>
    %353 = arith.divf %351, %352 : vector<10x1xf32>
    %354 = vector.broadcast %346 : vector<10x1xf32> to vector<10x32xf32>
    %355 = arith.subf %340, %354 : vector<10x32xf32>
    %cst_131 = arith.constant 9.99999997E-7 : f32
    %356 = vector.broadcast %cst_131 : f32 to vector<10x1xf32>
    %357 = arith.addf %353, %356 : vector<10x1xf32>
    %358 = math.rsqrt %357 : vector<10x1xf32>
    %359 = vector.broadcast %358 : vector<10x1xf32> to vector<10x32xf32>
    %360 = arith.mulf %355, %359 : vector<10x32xf32>
    %361 = vector.broadcast %341 : vector<1x32xf32> to vector<10x32xf32>
    %362 = arith.mulf %360, %361 : vector<10x32xf32>
    %363 = vector.broadcast %342 : vector<1x32xf32> to vector<10x32xf32>
    %364 = arith.addf %362, %363 : vector<10x32xf32>
    %c0_132 = arith.constant 0 : index
    %c0_133 = arith.constant 0 : index
    %365 = vector.load %arg6[%c0_132, %c0_133] : memref<2x10xf32, #tpu.memory_space<vmem>>, vector<2x10xf32>
    %cst_134 = arith.constant dense<0.000000e+00> : vector<2x32xf32>
    %366 = tpu.matmul %365, %364, %cst_134 {dimension_numbers = #tpu.dot_dimension_numbers<[1], [0], [0], [1], [0, 0, 1, 1], [], []>} : vector<2x10xf32>, vector<10x32xf32>, vector<2x32xf32> -> vector<2x32xf32>
    %cst_135 = arith.constant 2.000000e-01 : f32
    %367 = vector.broadcast %cst_135 : f32 to vector<2x32xf32>
    %368 = arith.mulf %366, %367 : vector<2x32xf32>
    %c4 = arith.constant 4 : index
    %c0_136 = arith.constant 0 : index
    %369 = vector.load %arg7[%c4, %c0_136] : memref<18x32xf32, #tpu.memory_space<vmem>>, vector<1x32xf32>
    %c5 = arith.constant 5 : index
    %c0_137 = arith.constant 0 : index
    %370 = vector.load %arg7[%c5, %c0_137] : memref<18x32xf32, #tpu.memory_space<vmem>>, vector<1x32xf32>
    %cst_138 = arith.constant dense<0.000000e+00> : vector<2xf32>
    %371 = vector.multi_reduction <add>, %368, %cst_138 [1] : vector<2x32xf32> to vector<2xf32>
    %372 = vector.shape_cast %371 : vector<2xf32> to vector<2x1xf32>
    %cst_139 = arith.constant 3.200000e+01 : f32
    %373 = vector.broadcast %cst_139 : f32 to vector<2x1xf32>
    %374 = arith.divf %372, %373 : vector<2x1xf32>
    %375 = vector.broadcast %374 : vector<2x1xf32> to vector<2x32xf32>
    %376 = arith.subf %368, %375 : vector<2x32xf32>
    %377 = arith.mulf %376, %376 : vector<2x32xf32>
    %cst_140 = arith.constant dense<0.000000e+00> : vector<2xf32>
    %378 = vector.multi_reduction <add>, %377, %cst_140 [1] : vector<2x32xf32> to vector<2xf32>
    %379 = vector.shape_cast %378 : vector<2xf32> to vector<2x1xf32>
    %cst_141 = arith.constant 3.200000e+01 : f32
    %380 = vector.broadcast %cst_141 : f32 to vector<2x1xf32>
    %381 = arith.divf %379, %380 : vector<2x1xf32>
    %382 = vector.broadcast %374 : vector<2x1xf32> to vector<2x32xf32>
    %383 = arith.subf %368, %382 : vector<2x32xf32>
    %cst_142 = arith.constant 9.99999997E-7 : f32
    %384 = vector.broadcast %cst_142 : f32 to vector<2x1xf32>
    %385 = arith.addf %381, %384 : vector<2x1xf32>
    %386 = math.rsqrt %385 : vector<2x1xf32>
    %387 = vector.broadcast %386 : vector<2x1xf32> to vector<2x32xf32>
    %388 = arith.mulf %383, %387 : vector<2x32xf32>
    %389 = vector.broadcast %369 : vector<1x32xf32> to vector<2x32xf32>
    %390 = arith.mulf %388, %389 : vector<2x32xf32>
    %391 = vector.broadcast %370 : vector<1x32xf32> to vector<2x32xf32>
    %392 = arith.addf %390, %391 : vector<2x32xf32>
    %c0_143 = arith.constant 0 : index
    %c0_144 = arith.constant 0 : index
    %393 = vector.load %arg14[%c0_143, %c0_144] : memref<2x32xf32, #tpu.memory_space<vmem>>, vector<2x32xf32>
    tpu.vector_store %arg14[%c0_143, %c0_144], %392 {strides = array<i32>} : memref<2x32xf32, #tpu.memory_space<vmem>>, vector<2x32xf32>,
    return
  }
}

</mosaic_0001>

<bundles_post_ra>
// kernel: feature_vit_forward.1
= control target key start
LH: loop header
LB: loop body
LE: loop exit
PB: predicated region body
PF: predicated region fallthrough
CT: control target
= control target key end

     0   :  { %s5013_s0 = inlined_call_operand.vmem [shape: f32[8,256], index: 0, kind: input, shape index: {}]   ;;  %s5014_s1 = inlined_call_operand.vmem [shape: f32[256,32], index: 1, kind: input, shape index: {}]   ;;  %s5015_s2 = inlined_call_operand.vmem [shape: f32[10,1], index: 2, kind: input, shape index: {}]   ;;  %s5016_s3 = inlined_call_operand.vmem [shape: f32[10,8], index: 3, kind: input, shape index: {}]   ;;  %s5017_s4 = inlined_call_operand.vmem [shape: f32[10,32], index: 4, kind: input, shape index: {}]   ;;  %s5018_s5 = inlined_call_operand.vmem [shape: f32[10,10], index: 5, kind: input, shape index: {}]   ;;  %s5019_s6 = inlined_call_operand.vmem [shape: f32[2,10], index: 6, kind: input, shape index: {}]   ;;  %s5020_s7 = inlined_call_operand.vmem [shape: f32[18,32], index: 7, kind: input, shape index: {}]   ;;  %s5021_s8 = inlined_call_operand.vmem [shape: f32[2,96], index: 8, kind: input, shape index: {}]   ;;  %s5022_s9 = inlined_call_operand.vmem [shape: f32[2,128], index: 9, kind: input, shape index: {}]   ;;  %s5023_s10 = inlined_call_operand.vmem [shape: f32[64,96], index: 10, kind: input, shape index: {}]   ;;  %s5024_s11 = inlined_call_operand.vmem [shape: f32[64,32], index: 11, kind: input, shape index: {}]   ;;  %s5025_s12 = inlined_call_operand.vmem [shape: f32[64,128], index: 12, kind: input, shape index: {}]   ;;  %s5026_s13 = inlined_call_operand.vmem [shape: f32[256,32], index: 13, kind: input, shape index: {}]   ;;  %s5027_s14 = inlined_call_operand.hbm [shape: f32[2,32], index: 14, kind: output, shape index: {}]  }
   0x1   :  { %v81_v0 = vld [vmem:[%s5014_s1 + $0xf8] sm:$0xff]  ;;  %v80_v2 = vld [vmem:[%s5014_s1 + $0xf0] sm:$0xff]  ;;  %v79_v4 = vld [vmem:[%s5014_s1 + $0xe8] sm:$0xff] }
   0x2   :  { %v65_v1 = vld [vmem:[%s5014_s1 + $0x78] sm:$0xff]  ;;  %3592 = vmatprep.subr.mxu0 %v81_v0  ;;  %v64_v3 = vld [vmem:[%s5014_s1 + $0x70] sm:$0xff]  ;;  %v63_v5 = vld [vmem:[%s5014_s1 + $0x68] sm:$0xff] }
   0x3   :  { %3593 = vmatpush3.msra.mxu0 %v65_v1  ;;  %v78_v6 = vld [vmem:[%s5014_s1 + $0xe0] sm:$0xff]  ;;  %v77_v8 = vld [vmem:[%s5014_s1 + $0xd8] sm:$0xff]  ;;  %v76_v10 = vld [vmem:[%s5014_s1 + $0xd0] sm:$0xff] }
   0x4   :  { %3594 = vmatprep.subr.mxu0 %v80_v2  ;;  %v62_v7 = vld [vmem:[%s5014_s1 + $0x60] sm:$0xff]  ;;  %v61_v9 = vld [vmem:[%s5014_s1 + $0x58] sm:$0xff]  ;;  %v60_v11 = vld [vmem:[%s5014_s1 + $0x50] sm:$0xff] }
   0x5   :  { %3595 = vmatpush3.msra.mxu0 %v64_v3  ;;  %v75_v12 = vld [vmem:[%s5014_s1 + $0xc8] sm:$0xff] }
   0x6   :  { %3596 = vmatprep.subr.mxu0 %v79_v4  ;;  %v49_v13 = vld [vmem:[%s5013_s0 + $0x8] sm:$0xff] }
   0x7   :  { %3597 = vmatpush3.msra.mxu0 %v63_v5  ;;  %v59_v14 = vld [vmem:[%s5014_s1 + $0x48] sm:$0xff]  ;;  %151 = vmatprep.mubr.f32.mxu0 %v49_v13 }
   0x8   :  { %3598 = vmatprep.subr.mxu0 %v78_v6 }
   0x9   :  { %3599 = vmatpush3.msra.mxu0 %v62_v7 }
   0xa   :  { %3600 = vmatprep.subr.mxu0 %v77_v8 }
   0xb   :  { %3601 = vmatpush3.msra.mxu0 %v61_v9 }
   0xc   :  { %3602 = vmatprep.subr.mxu0 %v76_v10 }
   0xd   :  { %19 = vsyncpa [#allocation3], 0  ;;  %3603 = vmatpush3.msra.mxu0 %v60_v11  ;;  %v74_v15 = vld [vmem:[%s5014_s1 + $0xc0] sm:$0xff]  ;;  %v73_v17 = vld [vmem:[%s5014_s1 + $0xb8] sm:$0xff]  ;;  %vm178_vm0 = vcmask 64512   ;;  %v4193_v36 = vmov 0  }
   0xe   :  { %3604 = vmatprep.subr.mxu0 %v75_v12  ;;  %v58_v16 = vld [vmem:[%s5014_s1 + $0x40] sm:$0xff]  ;;  %v57_v18 = vld [vmem:[%s5014_s1 + $0x38] sm:$0xff]  ;;  %v72_v19 = vld [vmem:[%s5014_s1 + $0xb0] sm:$0xff]  ;;  %4074 = vset.pattern.permute.xlu0 %v4193_v36  ;;  %vm304_vm1 = vcmask 261120   ;;  %vm308_vm2 = vcmask 254976   ;;  %s4194_s24 = smov 96  }
   0xf   :  { %3605 = vmatpush3.msra.mxu0 %v59_v14  ;;  %v56_v20 = vld [vmem:[%s5014_s1 + $0x30] sm:$0xff]  ;;  %v71_v21 = vld [vmem:[%s5014_s1 + $0xa8] sm:$0xff]  ;;  %v70_v23 = vld [vmem:[%s5014_s1 + $0xa0] sm:$0xff]  ;;  %vm527_vm3 = vcmask 74752   ;;  %vm523_vm4 = vcmask 80896   ;;  %s4196_s28 = smov 88  }
  0x10   :  { %3606 = vmatprep.subr.mxu0 %v74_v15  ;;  %v55_v22 = vld [vmem:[%s5014_s1 + $0x28] sm:$0xff]  ;;  %v54_v24 = vld [vmem:[%s5014_s1 + $0x20] sm:$0xff]  ;;  %v69_v25 = vld [vmem:[%s5014_s1 + $0x98] sm:$0xff]  ;;  %vm558_vm5 = vcmask 1041408   ;;  %s4198_s15 = smov 56   ;;  %s4199_s16 = smov 80  }
  0x11   :  { %3607 = vmatpush3.msra.mxu0 %v58_v16  ;;  %v53_v26 = vld [vmem:[%s5014_s1 + $0x18] sm:$0xff]  ;;  %v68_v27 = vld [vmem:[%s5014_s1 + $0x90] sm:$0xff]  ;;  %v67_v29 = vld [vmem:[%s5014_s1 + $0x88] sm:$0xff]  ;;  %s4200_s17 = smov 112   ;;  %s4201_s18 = smov 72   ;;  %vm4206_vm6 = vmmov 0  }
  0x12   :  { %3608 = vmatprep.subr.mxu0 %v73_v17  ;;  %v52_v28 = vld [vmem:[%s5014_s1 + $0x10] sm:$0xff]  ;;  %v51_v30 = vld [vmem:[%s5014_s1 + $0x8] sm:$0xff]  ;;  %v66_v31 = vld [vmem:[%s5014_s1 + $0x80] sm:$0xff]  ;;  %s4202_s19 = smov 104   ;;  %s4203_s21 = smov 48  }
  0x13   :  { %3609 = vmatpush3.msra.mxu0 %v57_v18  ;;  %v50_v32 = vld [vmem:[%s5014_s1] sm:$0xff]  ;;  %v158_v37 = vld [vmem:[%s5015_s2 + $0x8] sm:$0x3]  ;;  %v277_v5 = vld [vmem:[%s5023_s10 + $0x18] sm:$0xff] }
  0x14   :  { %3610 = vmatprep.subr.mxu0 %v72_v19  ;;  %v48_v33 = vld [vmem:[%s5013_s0] sm:$0xff]  ;;  %v177_v43 = vld [vmem:[%s5016_s3 + $0x8] sm:$0x3]  ;;  %v276_v6 = vld [vmem:[%s5023_s10 + $0x10] sm:$0xff]  ;;  %s4207_s0 = smov [#allocation2]  }
  0x15   :  { %3611 = vmatpush3.msra.mxu0 %v56_v20  ;;  %v176_v34 = vld [vmem:[%s5016_s3] sm:$0xff]  ;;  %v263_v54 = vld [vmem:[%s5017_s4 + $0x8] sm:$0x3]  ;;  %s4195_s3 = smov 64   ;;  %s3478_s22 = sshll.u32 %s4207_s0, 4  ;;  %s3479_s22 = int_to_ptr.vmem [resolvable:$true] %s3478_s22 }
  0x16   :  { %3612 = vmatprep.subr.mxu0 %v71_v21  ;;  %v157_v35 = vld [vmem:[%s5015_s2] sm:$0xff]  ;;  %v275_v7 = vld [vmem:[%s5023_s10 + $0x8] sm:$0xff]  ;;  %s4204_s2 = smov 40   ;;  %s4171_s23 = scalar_lea.vmem %s3479_s22, 32 }
  0x17   :  { %3613 = vmatpush3.msra.mxu0 %v55_v22  ;;  %162 = vperm.xlu0 %4074, %v157_v35   ;;  %v3486_v39 = vld [vmem:[%s5020_s7] ss:$0 sm:$0xff]  ;;  %v3487_v45 = vld [vmem:[%s5020_s7 + $0x1] ss:$0 sm:$0xff]  ;;  %v3490_v16 = vld [vmem:[%s5020_s7 + $0x6] ss:$0 sm:$0xff]  ;;  %p4172_p0 = scmp.ne.s32.totalorder %s3479_s22, %s4171_s23  ;;  %p4176_p1 = scmp.lt.s32.totalorder %s3479_s22, %s3479_s22 }
  0x18   :  { %3614 = vmatprep.subr.mxu0 %v70_v23  ;;  %v262_v51 = vld [vmem:[%s5017_s4] sm:$0xff]  ;;  %s4197_s4 = smov 120   ;;  %p4177_p2 = scmp.lt.s32.totalorder %s4171_s23, %s4171_s23 }
  0x19   :  { %3615 = vmatpush3.msra.mxu0 %v54_v24  ;;  %v274_v8 = vld [vmem:[%s5023_s10] sm:$0xff] }
  0x1a   :  { %3616 = vmatprep.subr.mxu0 %v69_v25  ;;  %v3491_v18 = vld [vmem:[%s5020_s7 + $0x7] ss:$0 sm:$0xff]  ;;  %v3492_v25 = vld [vmem:[%s5021_s8] ss:$0 sm:$0xff]  ;;  %p4178_p3 = por %p4177_p2, %p4176_p1 }
  0x1b   :  { %3617 = vmatpush3.msra.mxu0 %v53_v26  ;;  %167 = vperm.xlu0 %4074, %v158_v37   ;;  %v4476_v36 = vld [vmem:[%s5018_s5] sm:$0xff] }
  0x1c   :  { %3618 = vmatprep.subr.mxu0 %v68_v27  ;;  %p4179_p4 = pnand %p4178_p3, %p4172_p0 }
  0x1d   :  { %3619 = vmatpush3.msra.mxu0 %v52_v28 }
  0x1e   :  { %3620 = vmatprep.subr.mxu0 %v67_v29 }
  0x1f   :  { %3621 = vmatpush3.msra.mxu0 %v51_v30 }
  0x20   :  { %3622 = vmatprep.subr.mxu0 %v66_v31 }
  0x21   :  { %3623 = vmatpush3.msra.mxu0 %v50_v32 }
  0x22   :  { %152 = vmatmul.mubr.f32.vlgmr.msra.gmra.mxu0 %v48_v33 }
  0x23   :  { %3783 = vmatprep.mubr.msk.f32.mxu0 %vm178_vm0, %v176_v34  ;;  %v4471_v34 = vld [vmem:[%s5018_s5 + $0x8] sm:$0x3] }
  0x92   :  { %v163_v44 = vpop.permute.xlu0 %162 }
  0x93   :  { %v174_v47 = vmul.f32 %v3487_v45, %v163_v44 }
  0x96   :  { %v168_v46 = vpop.permute.xlu0 %167 }
  0x97   :  { %v175_v48 = vmul.f32 %v3487_v45, %v168_v46 }
  0xe2   :  { %v3624_v38 = vpop.f32.mrf.mxu0 }
  0xe4   :  { %v3625_v40 = vpop.f32.mrf.mxu0 }
  0xe5   :  { %v3626_v41 = vadd.f32 %v3625_v40, %v3624_v38 }
  0xe7   :  { %v154_v42 = vadd.f32 %v3626_v41, %v3486_v39 }
  0xe9   :  { %3781 = vmatprep.subr.mxu0 %v154_v42 }
  0xea   :  { %3782 = vmatpush3.msra.mxu0 %v154_v42 }
  0xeb   :  { %3784 = vmatmul.mubr.msk.f32.vlgmr.msra.gmra.mxu0 %vm178_vm0, %v177_v43  ;;  %3786 = vmatprep.subr.mxu0 %v277_v5 }
  0xec   :  { %3787 = vmatpush3.msra.mxu0 %v277_v5 }
  0xed   :  { %3788 = vmatprep.subr.mxu0 %v276_v6 }
  0xee   :  { %3789 = vmatpush3.msra.mxu0 %v276_v6 }
  0xef   :  { %3790 = vmatprep.subr.mxu0 %v275_v7 }
  0xf0   :  { %3791 = vmatpush3.msra.mxu0 %v275_v7 }
  0xf1   :  { %3792 = vmatprep.subr.mxu0 %v274_v8 }
  0xf2   :  { %3793 = vmatpush3.msra.mxu0 %v274_v8 }
 0x1ab   :  { %v3785_v49 = vpop.f32.mrf.mxu0 }
 0x1ac   :  { %v261_v52 = vadd.f32 %v3785_v49, %v175_v48 }
 0x1ad   :  { %v251_v50 = vpop.f32.mrf.mxu0 }
 0x1ae   :  { %v260_v53 = vadd.f32 %v251_v50, %v174_v47  ;;  %v4413_v56 = vadd.f32 %v263_v54, %v261_v52 }
 0x1b0   :  { %v4411_v55 = vadd.f32 %v262_v51, %v260_v53  ;;  %v309_v58 = vsel %vm308_vm2, %v4413_v56, 0.0 }
 0x1b2   :  { %v305_v57 = vsel %vm304_vm1, %v4411_v55, 0.0 }
 0x1b3   :  { %306 = vadd.xlane.f32.xlu1 %v305_v57 }
 0x1b7   :  { %310 = vadd.xlane.f32.xlu1 %v309_v58  ;;  %v278_v58 = vld [vmem:[%s5024_s11] sm:$0xff] }
 0x23c   :  { %v307_v59 = vpop.xlane.xlu1 %306 }
 0x23d   :  { %v313_v60 = vmul.f32 0.03125, %v307_v59 }
 0x23f   :  { %v315_v61 = vsub.f32 %v4411_v55, %v313_v60 }
 0x240   :  { %v311_v62 = vpop.xlane.xlu1 %310 }
 0x241   :  { %v314_v63 = vmul.f32 0.03125, %v311_v62  ;;  %v317_v0 = vmul.f32 %v315_v61, %v315_v61 }
 0x243   :  { %v316_v1 = vsub.f32 %v4413_v56, %v314_v63  ;;  %v319_v2 = vsel %vm304_vm1, %v317_v0, 0.0 }
 0x244   :  { %320 = vadd.xlane.f32.xlu0 %v319_v2 }
 0x245   :  { %v318_v3 = vmul.f32 %v316_v1, %v316_v1 }
 0x247   :  { %v322_v4 = vsel %vm308_vm2, %v318_v3, 0.0 }
 0x248   :  { %323 = vadd.xlane.f32.xlu1 %v322_v4 }
 0x2cd   :  { %v321_v9 = vpop.xlane.xlu0 %320 }
 0x2ce   :  { %v325_v10 = vmul.f32 0.03125, %v321_v9 }
 0x2d0   :  { %v327_v11 = vadd.f32 1e-06, %v325_v10 }
 0x2d1   :  { %v324_v12 = vpop.xlane.xlu1 %323 }
 0x2d2   :  { %4075 = vrsqrt.f32 %v327_v11  ;;  %v326_v13 = vmul.f32 0.03125, %v324_v12 }
 0x2d4   :  { %v328_v14 = vadd.f32 1e-06, %v326_v13 }
 0x2d6   :  { %4077 = vrsqrt.f32 %v328_v14 }
 0x2df   :  { %v4076_v15 = vpop.eup %4075 }
 0x2e0   :  { %v331_v17 = vmul.f32 %v4076_v15, %v315_v61 }
 0x2e2   :  { %v337_v19 = vmul.f32 %v3490_v16, %v331_v17 }
 0x2e3   :  { %v4078_v20 = vpop.eup %4077 }
 0x2e4   :  { %v332_v21 = vmul.f32 %v4078_v20, %v316_v1  ;;  %v343_v22 = vadd.f32 %v3491_v18, %v337_v19 }
 0x2e6   :  { %v338_v23 = vmul.f32 %v3490_v16, %v332_v21  ;;  %3794 = vmatprep.mubr.msk.f32.mxu0 %vm304_vm1, %v343_v22 }
 0x2e8   :  { %v344_v24 = vadd.f32 %v3491_v18, %v338_v23 }
 0x2ea   :  { %3795 = vmatmul.mubr.msk.f32.vlgmr.msra.gmra.mxu0 %vm304_vm1, %v344_v24 }
 0x3aa   :  { %v3796_v26 = vpop.f32.mrf.mxu0 }
 0x3ab   :  { %v4446_v27 = vadd.f32 %v3796_v26, %v3492_v25 }
 0x3ac   :  { %v421_v28 = vpop.f32.mrf.mxu0 }
 0x3ad   :  { %v4448_v29 = vadd.f32 %v3492_v25, %v421_v28  ;;  %436 = vrot.lane.b32.xlu1 %v4446_v27, %s4194_s24  ;;  %v4464_v33 = vmul.f32 0.35355338, %v4446_v27 }
 0x3af   :  { %v4453_v30 = vmul.f32 0.35355338, %v4448_v29 }
 0x3b1   :  { %434 = vrot.lane.b32.xlu1 %v4448_v29, %s4194_s24  ;;  %3801 = vmatprep.mubr.msk.f32.mxu1 %vm178_vm0, %v4453_v30 }
 0x41f   :  { %v437_v31 = vpop.permute.xlu1 %436 }
 0x420   :  { %3797 = vmatprep.subr.msk.mxu1 %vm178_vm0, %v437_v31 }
 0x421   :  { %3798 = vmatpush3.xpose.msk.msra.mxu1 %vm178_vm0, %v437_v31 }
 0x423   :  { %v435_v32 = vpop.permute.xlu1 %434 }
 0x424   :  { %3799 = vmatprep.subr.msk.mxu1 %vm178_vm0, %v435_v32 }
 0x425   :  { %3800 = vmatpush3.xpose.msk.msra.mxu1 %vm178_vm0, %v435_v32 }
 0x428   :  { %3802 = vmatmul.mubr.msk.f32.vlgmr.msra.gmra.mxu1 %vm178_vm0, %v4464_v33 }
 0x4e8   :  { %v3803_v35 = vpop.f32.mrf.mxu1 }
 0x4e9   :  { %v520_v37 = vadd.f32 %v3803_v35, %v4471_v34 }
 0x4ea   :  { %v514_v38 = vpop.f32.mrf.mxu1 }
 0x4eb   :  { %v515_v39 = vadd.f32 %v514_v38, %v4476_v36  ;;  %v528_v40 = vsel %vm527_vm3, %v520_v37, -inf }
 0x4ec   :  { %529 = vmax.xlane.f32.xlu0 %v528_v40 }
 0x4ed   :  { %v524_v41 = vsel %vm523_vm4, %v515_v39, -inf }
 0x4ee   :  { %525 = vmax.xlane.f32.xlu1 %v524_v41 }
 0x4ff   :  { %547 = vrot.lane.b32.xlu1 %v4448_v29, %s4195_s3 }
 0x575   :  { %v530_v42 = vpop.xlane.xlu0 %529 }
 0x576   :  { %v532_v43 = vsub.f32 %v520_v37, %v530_v42 }
 0x577   :  { %v526_v44 = vpop.xlane.xlu1 %525 }
 0x578   :  { %v535_v45 = vmul.f32 1.442695, %v532_v43  ;;  %v531_v46 = vsub.f32 %v515_v39, %v526_v44  ;;  %v279_v43 = vld [vmem:[%s5024_s11 + $0x8] sm:$0xff] }
 0x57a   :  { %4079 = vpow2.f32 %v535_v45  ;;  %v533_v47 = vmul.f32 1.442695, %v531_v46 }
 0x57b   :  { %v548_v57 = vpop.permute.xlu1 %547 }
 0x57c   :  { %4081 = vpow2.f32 %v533_v47 }
 0x587   :  { %v4080_v48 = vpop.eup %4079 }
 0x588   :  { %v540_v49 = vsel %vm527_vm3, %v4080_v48, 0.0 }
 0x589   :  { %v4082_v50 = vpop.eup %4081  ;;  %541 = vadd.xlane.f32.xlu0 %v540_v49 }
 0x58a   :  { %v537_v51 = vsel %vm523_vm4, %v4082_v50, 0.0 }
 0x58d   :  { %538 = vadd.xlane.f32.xlu0 %v537_v51 }
 0x5a3   :  { %549 = vrot.lane.b32.xlu0 %v4446_v27, %s4195_s3 }
 0x5a7   :  { %729 = vrot.lane.b32.xlu0 %v4446_v27, %s4196_s28 }
 0x5ab   :  { %727 = vrot.lane.b32.xlu0 %v4448_v29, %s4196_s28 }
 0x5af   :  { %723 = vrot.lane.b32.xlu0 %v4453_v30, %s4197_s4 }
 0x5b3   :  { %725 = vrot.lane.b32.xlu0 %v4464_v33, %s4197_s4 }
 0x612   :  { %v542_v52 = vpop.xlane.xlu0 %541 }
 0x613   :  { %4083 = vrcp.f32 %v542_v52 }
 0x616   :  { %v539_v53 = vpop.xlane.xlu0 %538 }
 0x617   :  { %4085 = vrcp.f32 %v539_v53 }
 0x61a   :  { %v550_v54 = vpop.permute.xlu0 %549 }
 0x61b   :  { %3804 = vmatprep.subr.msk.mxu1 %vm558_vm5, %v550_v54 }
 0x61c   :  { %3805 = vmatpush3.msk.msra.mxu1 %vm558_vm5, %v550_v54 }
 0x61d   :  { %3806 = vmatprep.subr.mxu1 %v548_v57 }
 0x61e   :  { %3807 = vmatpush3.msra.mxu1 %v548_v57  ;;  %v730_v63 = vpop.permute.xlu0 %729 }
 0x61f   :  { %3811 = vmatprep.subr.mxu1 %v278_v58 }
 0x620   :  { %v4084_v59 = vpop.eup %4083 }
 0x621   :  { %v546_v62 = vmul.f32 %v4084_v59, %v4080_v48 }
 0x622   :  { %v728_v0 = vpop.permute.xlu0 %727 }
 0x624   :  { %v4086_v60 = vpop.eup %4085 }
 0x625   :  { %v545_v61 = vmul.f32 %v4086_v60, %v4082_v50 }
 0x626   :  { %v724_v3 = vpop.permute.xlu0 %723 }
 0x627   :  { %3808 = vmatprep.mubr.msk.f32.mxu1 %vm523_vm4, %v545_v61 }
 0x628   :  { %3809 = vmatmul.mubr.msk.f32.vlgmr.msra.gmra.mxu1 %vm523_vm4, %v546_v62 }
 0x629   :  { %3812 = vmatpush3.msra.mxu1 %v278_v58 }
 0x62a   :  { %3816 = vmatprep.subr.msk.mxu1 %vm178_vm0, %v730_v63  ;;  %v726_v4 = vpop.permute.xlu0 %725 }
 0x6e8   :  { %v3810_v1 = vpop.f32.mrf.mxu1 }
 0x6ea   :  { %v627_v2 = vpop.f32.mrf.mxu1 }
 0x6eb   :  { %3813 = vmatprep.mubr.msk.f32.mxu1 %vm178_vm0, %v627_v2 }
 0x6ec   :  { %3814 = vmatmul.mubr.msk.f32.vlgmr.msra.gmra.mxu1 %vm178_vm0, %v3810_v1 }
 0x6ed   :  { %3817 = vmatpush3.xpose.msk.msra.mxu1 %vm178_vm0, %v730_v63  ;;  %3820 = vmatprep.mubr.msk.f32.mxu1 %vm178_vm0, %v724_v3 }
 0x6ee   :  { %3818 = vmatprep.subr.msk.mxu1 %vm178_vm0, %v728_v0 }
 0x6f1   :  { %3819 = vmatpush3.xpose.msk.msra.mxu1 %vm178_vm0, %v728_v0  ;;  %v4573_v0 = vld [vmem:[%s5020_s7 + $0x8] ss:$0 sm:$0xff] }
 0x6f2   :  { %3830 = vmatprep.subr.mxu1 %v279_v43 }
 0x6f4   :  { %3821 = vmatmul.mubr.msk.f32.vlgmr.msra.gmra.mxu1 %vm178_vm0, %v726_v4 }
 0x6f5   :  { %3831 = vmatpush3.msra.mxu1 %v279_v43  ;;  %v281_v43 = vld [vmem:[%s5024_s11 + $0x18] sm:$0xff] }
 0x7ac   :  { %v4511_v5 = vpop.f32.mrf.mxu1 }
 0x7ad   :  { %v722_v1 = vadd.f32 %v4511_v5, %v4573_v0 }
 0x7ae   :  { %v4513_v6 = vpop.f32.mrf.mxu1 }
 0x7b4   :  { %v3822_v7 = vpop.f32.mrf.mxu1 }
 0x7b5   :  { %v811_v8 = vadd.f32 %v3822_v7, %v4471_v34 }
 0x7b6   :  { %v805_v9 = vpop.f32.mrf.mxu1 }
 0x7b7   :  { %v806_v10 = vadd.f32 %v805_v9, %v4476_v36  ;;  %v817_v11 = vsel %vm527_vm3, %v811_v8, -inf }
 0x7b8   :  { %818 = vmax.xlane.f32.xlu0 %v817_v11 }
 0x7b9   :  { %v814_v12 = vsel %vm523_vm4, %v806_v10, -inf }
 0x7ba   :  { %815 = vmax.xlane.f32.xlu1 %v814_v12 }
 0x841   :  { %v819_v13 = vpop.xlane.xlu0 %818 }
 0x842   :  { %v821_v14 = vsub.f32 %v811_v8, %v819_v13 }
 0x843   :  { %v816_v15 = vpop.xlane.xlu1 %815 }
 0x844   :  { %v824_v16 = vmul.f32 1.442695, %v821_v14  ;;  %v820_v17 = vsub.f32 %v806_v10, %v816_v15 }
 0x846   :  { %4087 = vpow2.f32 %v824_v16  ;;  %v822_v18 = vmul.f32 1.442695, %v820_v17 }
 0x848   :  { %4089 = vpow2.f32 %v822_v18 }
 0x853   :  { %v4088_v19 = vpop.eup %4087 }
 0x854   :  { %v829_v20 = vsel %vm527_vm3, %v4088_v19, 0.0 }
 0x855   :  { %v4090_v21 = vpop.eup %4089  ;;  %830 = vadd.xlane.f32.xlu1 %v829_v20 }
 0x856   :  { %v826_v22 = vsel %vm523_vm4, %v4090_v21, 0.0 }
 0x857   :  { %827 = vadd.xlane.f32.xlu0 %v826_v22 }
 0x866   :  { %836 = vrot.lane.b32.xlu1 %v4448_v29, %s4198_s15 }
 0x86a   :  { %1013 = vrot.lane.b32.xlu1 %v4446_v27, %s4199_s16 }
 0x86d   :  { %838 = vrot.lane.b32.xlu0 %v4446_v27, %s4198_s15 }
 0x86e   :  { %1007 = vrot.lane.b32.xlu1 %v4453_v30, %s4200_s17 }
 0x871   :  { %1011 = vrot.lane.b32.xlu0 %v4448_v29, %s4199_s16 }
 0x872   :  { %1297 = vrot.lane.b32.xlu1 %v4446_v27, %s4201_s18 }
 0x875   :  { %1009 = vrot.lane.b32.xlu0 %v4464_v33, %s4200_s17 }
 0x876   :  { %1291 = vrot.lane.b32.xlu1 %v4453_v30, %s4202_s19 }
 0x879   :  { %1295 = vrot.lane.b32.xlu0 %v4448_v29, %s4201_s18 }
 0x87d   :  { %1293 = vrot.lane.b32.xlu0 %v4464_v33, %s4202_s19 }
 0x8de   :  { %v831_v23 = vpop.xlane.xlu1 %830 }
 0x8df   :  { %4091 = vrcp.f32 %v831_v23 }
 0x8e0   :  { %v828_v24 = vpop.xlane.xlu0 %827 }
 0x8e1   :  { %4093 = vrcp.f32 %v828_v24 }
 0x8e2   :  { %v837_v25 = vpop.permute.xlu1 %836 }
 0x8e4   :  { %v839_v26 = vpop.permute.xlu0 %838 }
 0x8e5   :  { %3823 = vmatprep.subr.msk.mxu0 %vm558_vm5, %v839_v26 }
 0x8e6   :  { %3824 = vmatpush3.msk.msra.mxu0 %vm558_vm5, %v839_v26  ;;  %v1014_v28 = vpop.permute.xlu1 %1013 }
 0x8e7   :  { %3825 = vmatprep.subr.mxu0 %v837_v25 }
 0x8e8   :  { %3826 = vmatpush3.msra.mxu0 %v837_v25  ;;  %v1012_v35 = vpop.permute.xlu0 %1011 }
 0x8e9   :  { %3835 = vmatprep.subr.msk.mxu0 %vm178_vm0, %v1014_v28 }
 0x8ea   :  { %v1008_v32 = vpop.permute.xlu1 %1007 }
 0x8ec   :  { %v4092_v30 = vpop.eup %4091  ;;  %v1010_v39 = vpop.permute.xlu0 %1009 }
 0x8ed   :  { %v835_v37 = vmul.f32 %v4092_v30, %v4088_v19 }
 0x8ee   :  { %v4094_v31 = vpop.eup %4093  ;;  %v1298_v38 = vpop.permute.xlu1 %1297 }
 0x8ef   :  { %v834_v33 = vmul.f32 %v4094_v31, %v4090_v21  ;;  %v280_v31 = vld [vmem:[%s5024_s11 + $0x10] sm:$0xff] }
 0x8f0   :  { %v1296_v41 = vpop.permute.xlu0 %1295 }
 0x8f1   :  { %3827 = vmatprep.mubr.msk.f32.mxu0 %vm523_vm4, %v834_v33 }
 0x8f2   :  { %3828 = vmatmul.mubr.msk.f32.vlgmr.msra.gmra.mxu0 %vm523_vm4, %v835_v37  ;;  %v1292_v40 = vpop.permute.xlu1 %1291 }
 0x8f3   :  { %3836 = vmatpush3.xpose.msk.msra.mxu0 %vm178_vm0, %v1014_v28  ;;  %3839 = vmatprep.mubr.msk.f32.mxu0 %vm178_vm0, %v1008_v32 }
 0x8f4   :  { %3837 = vmatprep.subr.msk.mxu0 %vm178_vm0, %v1012_v35  ;;  %v1294_v42 = vpop.permute.xlu0 %1293 }
 0x8f7   :  { %3838 = vmatpush3.xpose.msk.msra.mxu0 %vm178_vm0, %v1012_v35 }
 0x8f8   :  { %3854 = vmatprep.subr.msk.mxu0 %vm178_vm0, %v1298_v38 }
 0x8fa   :  { %3840 = vmatmul.mubr.msk.f32.vlgmr.msra.gmra.mxu0 %vm178_vm0, %v1010_v39 }
 0x8fb   :  { %3855 = vmatpush3.xpose.msk.msra.mxu0 %vm178_vm0, %v1298_v38  ;;  %3858 = vmatprep.mubr.msk.f32.mxu0 %vm178_vm0, %v1292_v40 }
 0x8fc   :  { %3856 = vmatprep.subr.msk.mxu0 %vm178_vm0, %v1296_v41 }
 0x8ff   :  { %3857 = vmatpush3.xpose.msk.msra.mxu0 %vm178_vm0, %v1296_v41 }
 0x902   :  { %3859 = vmatmul.mubr.msk.f32.vlgmr.msra.gmra.mxu0 %vm178_vm0, %v1294_v42 }
 0x9b2   :  { %v3829_v44 = vpop.f32.mrf.mxu0 }
 0x9b4   :  { %v915_v45 = vpop.f32.mrf.mxu0 }
 0x9b5   :  { %3832 = vmatprep.mubr.msk.f32.mxu1 %vm178_vm0, %v915_v45 }
 0x9b6   :  { %3833 = vmatmul.mubr.msk.f32.vlgmr.msra.gmra.mxu1 %vm178_vm0, %v3829_v44  ;;  %v721_v44 = vadd.f32 %v4573_v0, %v4513_v6 }
 0x9ba   :  { %v3841_v46 = vpop.f32.mrf.mxu0 }
 0x9bb   :  { %v1095_v47 = vadd.f32 %v3841_v46, %v4471_v34 }
 0x9bc   :  { %v1089_v48 = vpop.f32.mrf.mxu0 }
 0x9bd   :  { %v1090_v49 = vadd.f32 %v1089_v48, %v4476_v36  ;;  %v1101_v50 = vsel %vm527_vm3, %v1095_v47, -inf }
 0x9be   :  { %1102 = vmax.xlane.f32.xlu0 %v1101_v50 }
 0x9bf   :  { %v1098_v51 = vsel %vm523_vm4, %v1090_v49, -inf }
 0x9c0   :  { %1099 = vmax.xlane.f32.xlu1 %v1098_v51 }
 0x9c2   :  { %v3860_v4 = vpop.f32.mrf.mxu0 }
 0x9c3   :  { %v1379_v9 = vadd.f32 %v3860_v4, %v4471_v34 }
 0x9c4   :  { %v1373_v7 = vpop.f32.mrf.mxu0 }
 0x9c5   :  { %v1374_v8 = vadd.f32 %v1373_v7, %v4476_v36  ;;  %v1385_v11 = vsel %vm527_vm3, %v1379_v9, -inf  ;;  %v285_v7 = vld [vmem:[%s5025_s12 + $0x18] sm:$0xff] }
 0x9c6   :  { %3873 = vmatprep.subr.mxu0 %v285_v7 }
 0x9c7   :  { %v1382_v10 = vsel %vm523_vm4, %v1374_v8, -inf  ;;  %3874 = vmatpush3.msra.mxu0 %v285_v7 }
 0xa47   :  { %v1103_v52 = vpop.xlane.xlu0 %1102 }
 0xa48   :  { %v1105_v53 = vsub.f32 %v1095_v47, %v1103_v52 }
 0xa49   :  { %v1100_v54 = vpop.xlane.xlu1 %1099 }
 0xa4a   :  { %v1108_v57 = vmul.f32 1.442695, %v1105_v53  ;;  %v1104_v58 = vsub.f32 %v1090_v49, %v1100_v54 }
 0xa4c   :  { %4095 = vpow2.f32 %v1108_v57  ;;  %v1106_v59 = vmul.f32 1.442695, %v1104_v58 }
 0xa4e   :  { %4097 = vpow2.f32 %v1106_v59 }
 0xa59   :  { %v4096_v60 = vpop.eup %4095 }
 0xa5a   :  { %v1113_v61 = vsel %vm527_vm3, %v4096_v60, 0.0 }
 0xa5b   :  { %v4098_v62 = vpop.eup %4097  ;;  %1114 = vadd.xlane.f32.xlu1 %v1113_v61 }
 0xa5c   :  { %v1110_v63 = vsel %vm523_vm4, %v4098_v62, 0.0 }
 0xa5d   :  { %1111 = vadd.xlane.f32.xlu0 %v1110_v63 }
 0xa6c   :  { %1120 = vrot.lane.b32.xlu1 %v4448_v29, %s4203_s21 }
 0xa73   :  { %1122 = vrot.lane.b32.xlu0 %v4446_v27, %s4203_s21 }
 0xa76   :  { %v3834_v2 = vpop.f32.mrf.mxu1 }
 0xa77   :  { %v4579_v3 = vadd.f32 %v3834_v2, %v722_v1 }
 0xa78   :  { %v996_v32 = vpop.f32.mrf.mxu1 }
 0xa79   :  { %v1005_v46 = vadd.f32 %v996_v32, %v721_v44  ;;  %v297_v32 = vld [vmem:[%s5026_s13 + $0x58] sm:$0xff]  ;;  %v3534_v44 = vld [vmem:[%s5022_s9] ss:$0 sm:$0xff] }
 0xa90   :  { %1383 = vmax.xlane.f32.xlu1 %v1382_v10  ;;  %v282_v10 = vld [vmem:[%s5025_s12] sm:$0xff] }
 0xa92   :  { %1386 = vmax.xlane.f32.xlu0 %v1385_v11 }
 0xae4   :  { %v1115_v12 = vpop.xlane.xlu1 %1114 }
 0xae5   :  { %4099 = vrcp.f32 %v1115_v12 }
 0xae6   :  { %v1112_v13 = vpop.xlane.xlu0 %1111 }
 0xae7   :  { %4101 = vrcp.f32 %v1112_v13 }
 0xae8   :  { %v1121_v14 = vpop.permute.xlu1 %1120 }
 0xaea   :  { %v1123_v5 = vpop.permute.xlu0 %1122 }
 0xaeb   :  { %3842 = vmatprep.subr.msk.mxu1 %vm558_vm5, %v1123_v5 }
 0xaec   :  { %3843 = vmatpush3.msk.msra.mxu1 %vm558_vm5, %v1123_v5 }
 0xaed   :  { %3844 = vmatprep.subr.mxu1 %v1121_v14 }
 0xaee   :  { %3845 = vmatpush3.msra.mxu1 %v1121_v14 }
 0xaef   :  { %3849 = vmatprep.subr.mxu1 %v280_v31 }
 0xaf2   :  { %v4100_v15 = vpop.eup %4099 }
 0xaf3   :  { %v1119_v18 = vmul.f32 %v4100_v15, %v4096_v60 }
 0xaf4   :  { %v4102_v16 = vpop.eup %4101 }
 0xaf5   :  { %v1118_v17 = vmul.f32 %v4102_v16, %v4098_v62 }
 0xaf7   :  { %3846 = vmatprep.mubr.msk.f32.mxu1 %vm523_vm4, %v1118_v17  ;;  %v3532_v17 = vld [vmem:[%s5020_s7 + $0x9] ss:$0 sm:$0xff] }
 0xaf8   :  { %3847 = vmatmul.mubr.msk.f32.vlgmr.msra.gmra.mxu1 %vm523_vm4, %v1119_v18 }
 0xaf9   :  { %3850 = vmatpush3.msra.mxu1 %v280_v31  ;;  %v298_v31 = vld [vmem:[%s5026_s13 + $0x60] sm:$0xff] }
 0xb19   :  { %v1384_v19 = vpop.xlane.xlu1 %1383 }
 0xb1a   :  { %v1388_v20 = vsub.f32 %v1374_v8, %v1384_v19  ;;  %v284_v8 = vld [vmem:[%s5025_s12 + $0x10] sm:$0xff] }
 0xb1b   :  { %v1387_v21 = vpop.xlane.xlu0 %1386  ;;  %3875 = vmatprep.subr.mxu0 %v284_v8 }
 0xb1c   :  { %v1390_v22 = vmul.f32 1.442695, %v1388_v20  ;;  %v1389_v23 = vsub.f32 %v1379_v9, %v1387_v21  ;;  %v283_v9 = vld [vmem:[%s5025_s12 + $0x8] sm:$0xff]  ;;  %3876 = vmatpush3.msra.mxu0 %v284_v8 }
 0xb1d   :  { %3877 = vmatprep.subr.mxu0 %v283_v9 }
 0xb1e   :  { %4103 = vpow2.f32 %v1390_v22  ;;  %v1392_v24 = vmul.f32 1.442695, %v1389_v23  ;;  %3878 = vmatpush3.msra.mxu0 %v283_v9  ;;  %v3533_v22 = vld [vmem:[%s5020_s7 + $0xa] ss:$0 sm:$0xff] }
 0xb1f   :  { %3879 = vmatprep.subr.mxu0 %v282_v10 }
 0xb20   :  { %4105 = vpow2.f32 %v1392_v24  ;;  %3880 = vmatpush3.msra.mxu0 %v282_v10 }
 0xb2b   :  { %v4104_v25 = vpop.eup %4103 }
 0xb2c   :  { %v1394_v26 = vsel %vm523_vm4, %v4104_v25, 0.0 }
 0xb2d   :  { %v4106_v28 = vpop.eup %4105  ;;  %1395 = vadd.xlane.f32.xlu0 %v1394_v26  ;;  %v301_v26 = vld [vmem:[%s5026_s13 + $0x78] sm:$0xff] }
 0xb2e   :  { %v1397_v30 = vsel %vm527_vm3, %v4106_v28, 0.0 }
 0xb2f   :  { %1398 = vadd.xlane.f32.xlu1 %v1397_v30  ;;  %v299_v30 = vld [vmem:[%s5026_s13 + $0x68] sm:$0xff] }
 0xb40   :  { %1404 = vrot.lane.b32.xlu1 %v4448_v29, %s4204_s2 }
 0xb43   :  { %1406 = vrot.lane.b32.xlu0 %v4446_v27, %s4204_s2 }
 0xbb6   :  { %v1396_v35 = vpop.xlane.xlu0 %1395 }
 0xbb7   :  { %4107 = vrcp.f32 %v1396_v35  ;;  %v296_v35 = vld [vmem:[%s5026_s13 + $0x50] sm:$0xff] }
 0xbb8   :  { %v3848_v33 = vpop.f32.mrf.mxu1  ;;  %v1399_v37 = vpop.xlane.xlu1 %1398 }
 0xbb9   :  { %4109 = vrcp.f32 %v1399_v37  ;;  %v294_v37 = vld [vmem:[%s5026_s13 + $0x40] sm:$0xff] }
 0xbba   :  { %v1199_v38 = vpop.f32.mrf.mxu1  ;;  %v1407_v39 = vpop.permute.xlu0 %1406 }
 0xbbb   :  { %3851 = vmatprep.mubr.msk.f32.mxu1 %vm178_vm0, %v1199_v38  ;;  %3861 = vmatprep.subr.msk.mxu1 %vm558_vm5, %v1407_v39  ;;  %v293_v38 = vld [vmem:[%s5026_s13 + $0x38] sm:$0xff] }
 0xbbc   :  { %3852 = vmatmul.mubr.msk.f32.vlgmr.msra.gmra.mxu1 %vm178_vm0, %v3848_v33  ;;  %v1405_v40 = vpop.permute.xlu1 %1404  ;;  %v295_v33 = vld [vmem:[%s5026_s13 + $0x48] sm:$0xff] }
 0xbbd   :  { %3862 = vmatpush3.msk.msra.mxu1 %vm558_vm5, %v1407_v39  ;;  %v292_v39 = vld [vmem:[%s5026_s13 + $0x30] sm:$0xff] }
 0xbbe   :  { %3863 = vmatprep.subr.mxu1 %v1405_v40 }
 0xbbf   :  { %3864 = vmatpush3.msra.mxu1 %v1405_v40  ;;  %v291_v40 = vld [vmem:[%s5026_s13 + $0x28] sm:$0xff] }
 0xbc0   :  { %3868 = vmatprep.subr.mxu1 %v281_v43 }
 0xbc4   :  { %v4108_v27 = vpop.eup %4107 }
 0xbc5   :  { %v1402_v29 = vmul.f32 %v4108_v27, %v4104_v25  ;;  %v290_v27 = vld [vmem:[%s5026_s13 + $0x20] sm:$0xff] }
 0xbc6   :  { %v4110_v41 = vpop.eup %4109 }
 0xbc7   :  { %3865 = vmatprep.mubr.msk.f32.mxu1 %vm523_vm4, %v1402_v29  ;;  %v1403_v42 = vmul.f32 %v4110_v41, %v4106_v28  ;;  %v300_v28 = vld [vmem:[%s5026_s13 + $0x70] sm:$0xff]  ;;  %v289_v29 = vld [vmem:[%s5026_s13 + $0x18] sm:$0xff] }
 0xbc8   :  { %v288_v41 = vld [vmem:[%s5026_s13 + $0x10] sm:$0xff] }
 0xbc9   :  { %3866 = vmatmul.mubr.msk.f32.vlgmr.msra.gmra.mxu1 %vm523_vm4, %v1403_v42  ;;  %v287_v42 = vld [vmem:[%s5026_s13 + $0x8] sm:$0xff] }
 0xbca   :  { %3869 = vmatpush3.msra.mxu1 %v281_v43  ;;  %v286_v43 = vld [vmem:[%s5026_s13] sm:$0xff] }
 0xbcb   :  { %3884 = vmatprep.subr.mxu1 %v301_v26 }
 0xc7c   :  { %v3853_v45 = vpop.f32.mrf.mxu1 }
 0xc7d   :  { %v1290_v47 = vadd.f32 %v3853_v45, %v4579_v3 }
 0xc7e   :  { %v1280_v48 = vpop.f32.mrf.mxu1 }
 0xc7f   :  { %v1289_v49 = vadd.f32 %v1280_v48, %v1005_v46 }
 0xc89   :  { %v3867_v50 = vpop.f32.mrf.mxu1 }
 0xc8b   :  { %v1483_v51 = vpop.f32.mrf.mxu1 }
 0xc8c   :  { %3870 = vmatprep.mubr.msk.f32.mxu1 %vm178_vm0, %v1483_v51 }
 0xc8d   :  { %3871 = vmatmul.mubr.msk.f32.vlgmr.msra.gmra.mxu1 %vm178_vm0, %v3867_v50 }
 0xc8e   :  { %3885 = vmatpush3.msra.mxu1 %v301_v26 }
 0xc8f   :  { %3886 = vmatprep.subr.mxu1 %v300_v28 }
 0xc90   :  { %3887 = vmatpush3.msra.mxu1 %v300_v28 }
 0xc91   :  { %3888 = vmatprep.subr.mxu1 %v299_v30 }
 0xc92   :  { %3889 = vmatpush3.msra.mxu1 %v299_v30 }
 0xc93   :  { %3890 = vmatprep.subr.mxu1 %v298_v31 }
 0xc94   :  { %3891 = vmatpush3.msra.mxu1 %v298_v31 }
 0xc95   :  { %3892 = vmatprep.subr.mxu1 %v297_v32 }
 0xc96   :  { %3893 = vmatpush3.msra.mxu1 %v297_v32 }
 0xc97   :  { %3894 = vmatprep.subr.mxu1 %v296_v35 }
 0xc98   :  { %3895 = vmatpush3.msra.mxu1 %v296_v35 }
 0xc99   :  { %3896 = vmatprep.subr.mxu1 %v295_v33 }
 0xc9a   :  { %3897 = vmatpush3.msra.mxu1 %v295_v33 }
 0xc9b   :  { %3898 = vmatprep.subr.mxu1 %v294_v37 }
 0xc9c   :  { %3899 = vmatpush3.msra.mxu1 %v294_v37  ;;  %v3538_v37 = vld [vmem:[%s5020_s7 + $0xc] ss:$0 sm:$0xff] }
 0xc9d   :  { %3900 = vmatprep.subr.mxu1 %v293_v38 }
 0xc9e   :  { %3901 = vmatpush3.msra.mxu1 %v293_v38 }
 0xc9f   :  { %3902 = vmatprep.subr.mxu1 %v292_v39 }
 0xca0   :  { %3903 = vmatpush3.msra.mxu1 %v292_v39 }
 0xca1   :  { %3904 = vmatprep.subr.mxu1 %v291_v40 }
 0xca2   :  { %3905 = vmatpush3.msra.mxu1 %v291_v40 }
 0xca3   :  { %3906 = vmatprep.subr.mxu1 %v290_v27 }
 0xca4   :  { %3907 = vmatpush3.msra.mxu1 %v290_v27 }
 0xca5   :  { %3908 = vmatprep.subr.mxu1 %v289_v29 }
 0xca6   :  { %3909 = vmatpush3.msra.mxu1 %v289_v29  ;;  %v3539_v29 = vld [vmem:[%s5020_s7 + $0xd] ss:$0 sm:$0xff] }
 0xca7   :  { %3910 = vmatprep.subr.mxu1 %v288_v41 }
 0xca8   :  { %3911 = vmatpush3.msra.mxu1 %v288_v41 }
 0xca9   :  { %3912 = vmatprep.subr.mxu1 %v287_v42 }
 0xcaa   :  { %3913 = vmatpush3.msra.mxu1 %v287_v42 }
 0xcab   :  { %3914 = vmatprep.subr.mxu1 %v286_v43 }
 0xcac   :  { %3915 = vmatpush3.msra.mxu1 %v286_v43 }
 0xd4d   :  { %v3872_v52 = vpop.f32.mrf.mxu1 }
 0xd4e   :  { %v1574_v53 = vadd.f32 %v3872_v52, %v1290_v47 }
 0xd4f   :  { %v1564_v54 = vpop.f32.mrf.mxu1 }
 0xd50   :  { %v4613_v57 = vadd.f32 %v1574_v53, %v4413_v56  ;;  %v1573_v58 = vadd.f32 %v1564_v54, %v1289_v49 }
 0xd52   :  { %v4616_v6 = vadd.f32 %v1573_v58, %v4411_v55  ;;  %v1580_v59 = vsel %vm308_vm2, %v4613_v57, 0.0 }
 0xd53   :  { %1581 = vadd.xlane.f32.xlu0 %v1580_v59 }
 0xd54   :  { %v1577_v60 = vsel %vm304_vm1, %v4616_v6, 0.0 }
 0xd55   :  { %1578 = vadd.xlane.f32.xlu1 %v1577_v60 }
 0xddc   :  { %v1582_v61 = vpop.xlane.xlu0 %1581 }
 0xddd   :  { %v1584_v62 = vmul.f32 0.03125, %v1582_v61 }
 0xdde   :  { %v1579_v63 = vpop.xlane.xlu1 %1578 }
 0xddf   :  { %v1586_v0 = vsub.f32 %v4613_v57, %v1584_v62  ;;  %v1583_v1 = vmul.f32 0.03125, %v1579_v63 }
 0xde1   :  { %v1585_v56 = vsub.f32 %v4616_v6, %v1583_v1  ;;  %v1588_v2 = vmul.f32 %v1586_v0, %v1586_v0 }
 0xde3   :  { %v1592_v55 = vsel %vm308_vm2, %v1588_v2, 0.0  ;;  %v1587_v3 = vmul.f32 %v1585_v56, %v1585_v56 }
 0xde4   :  { %1593 = vadd.xlane.f32.xlu1 %v1592_v55 }
 0xde5   :  { %v1589_v4 = vsel %vm304_vm1, %v1587_v3, 0.0 }
 0xde6   :  { %1590 = vadd.xlane.f32.xlu0 %v1589_v4  ;;  %v3537_v4 = vld [vmem:[%s5020_s7 + $0xb] ss:$0 sm:$0xff] }
 0xe6d   :  { %v1594_v11 = vpop.xlane.xlu1 %1593 }
 0xe6e   :  { %v1596_v12 = vmul.f32 0.03125, %v1594_v11 }
 0xe6f   :  { %v1591_v13 = vpop.xlane.xlu0 %1590 }
 0xe70   :  { %v1598_v5 = vadd.f32 1e-06, %v1596_v12  ;;  %v1595_v14 = vmul.f32 0.03125, %v1591_v13 }
 0xe72   :  { %4111 = vrsqrt.f32 %v1598_v5  ;;  %v1597_v15 = vadd.f32 1e-06, %v1595_v14 }
 0xe74   :  { %4113 = vrsqrt.f32 %v1597_v15 }
 0xe7f   :  { %v4112_v16 = vpop.eup %4111 }
 0xe80   :  { %v1602_v18 = vmul.f32 %v4112_v16, %v1586_v0 }
 0xe81   :  { %v4114_v19 = vpop.eup %4113 }
 0xe82   :  { %v1601_v20 = vmul.f32 %v4114_v19, %v1585_v56  ;;  %v1608_v21 = vmul.f32 %v3532_v17, %v1602_v18 }
 0xe84   :  { %v1607_v23 = vmul.f32 %v3532_v17, %v1601_v20  ;;  %v1614_v25 = vadd.f32 %v3533_v22, %v1608_v21 }
 0xe86   :  { %v1613_v24 = vadd.f32 %v3533_v22, %v1607_v23  ;;  %v1810_v22 = vld [vmem:[%s5023_s10 + $0x38] sm:$0xff]  ;;  %v1809_v23 = vld [vmem:[%s5023_s10 + $0x30] sm:$0xff] }
 0xe87   :  { %3919 = vmatprep.subr.mxu0 %v1810_v22 }
 0xe88   :  { %3881 = vmatprep.mubr.msk.f32.mxu0 %vm304_vm1, %v1613_v24  ;;  %v1808_v24 = vld [vmem:[%s5023_s10 + $0x28] sm:$0xff] }
 0xe89   :  { %3882 = vmatmul.mubr.msk.f32.vlgmr.msra.gmra.mxu0 %vm304_vm1, %v1614_v25  ;;  %v1807_v25 = vld [vmem:[%s5023_s10 + $0x20] sm:$0xff] }
 0xe8a   :  { %3920 = vmatpush3.msra.mxu0 %v1810_v22 }
 0xe8b   :  { %3921 = vmatprep.subr.mxu0 %v1809_v23 }
 0xe8c   :  { %3922 = vmatpush3.msra.mxu0 %v1809_v23 }
 0xe8d   :  { %3923 = vmatprep.subr.mxu0 %v1808_v24 }
 0xe8e   :  { %3924 = vmatpush3.msra.mxu0 %v1808_v24 }
 0xe8f   :  { %3925 = vmatprep.subr.mxu0 %v1807_v25 }
 0xe90   :  { %3926 = vmatpush3.msra.mxu0 %v1807_v25 }
 0xf49   :  { %v3883_v45 = vpop.f32.mrf.mxu0 }
 0xf4a   :  { %v1697_v46 = vadd.f32 %v3883_v45, %v3534_v44 }
 0xf4b   :  { %v1691_v47 = vpop.f32.mrf.mxu0 }
 0xf4c   :  { %v1701_v48 = vmul.f32 %v1697_v46, %v1697_v46  ;;  %v1692_v49 = vadd.f32 %v3534_v44, %v1691_v47  ;;  %v3540_v44 = vld [vmem:[%s5021_s8 + $0x1] ss:$0 sm:$0xff] }
 0xf4e   :  { %v1703_v50 = vmul.f32 %v1701_v48, %v1697_v46  ;;  %v1700_v51 = vmul.f32 %v1692_v49, %v1692_v49 }
 0xf50   :  { %v1705_v52 = vmul.f32 0.044715, %v1703_v50  ;;  %v1702_v53 = vmul.f32 %v1700_v51, %v1692_v49 }
 0xf52   :  { %v1707_v54 = vadd.f32 %v1705_v52, %v1697_v46  ;;  %v1704_v58 = vmul.f32 0.044715, %v1702_v53 }
 0xf54   :  { %v1709_v59 = vmul.f32 0.7978846, %v1707_v54  ;;  %v1706_v60 = vadd.f32 %v1704_v58, %v1692_v49 }
 0xf56   :  { %4115 = vtanh.f32 %v1709_v59  ;;  %v1708_v61 = vmul.f32 0.7978846, %v1706_v60 }
 0xf58   :  { %4117 = vtanh.f32 %v1708_v61 }
 0xf63   :  { %v4116_v62 = vpop.eup %4115 }
 0xf64   :  { %v1713_v63 = vadd.f32 1.0, %v4116_v62 }
 0xf65   :  { %v4118_v0 = vpop.eup %4117 }
 0xf66   :  { %v1712_v1 = vadd.f32 1.0, %v4118_v0  ;;  %v1715_v56 = vmul.f32 0.5, %v1713_v63 }
 0xf68   :  { %v1714_v2 = vmul.f32 0.5, %v1712_v1  ;;  %v1717_v3 = vmul.f32 %v1715_v56, %v1697_v46 }
 0xf6a   :  { %v1716_v55 = vmul.f32 %v1714_v2, %v1692_v49 }
 0xf6c   :  { %3916 = vmatprep.mubr.f32.mxu1 %v1716_v55 }
 0xf6d   :  { %3917 = vmatmul.mubr.f32.vlgmr.msra.gmra.mxu1 %v1717_v3 }
0x102d   :  { %v3918_v7 = vpop.f32.mrf.mxu1 }
0x102e   :  { %v1794_v8 = vadd.f32 %v3918_v7, %v4613_v57 }
0x102f   :  { %v1784_v9 = vpop.f32.mrf.mxu1 }
0x1030   :  { %v4701_v10 = vadd.f32 %v3537_v4, %v1794_v8  ;;  %v1793_v11 = vadd.f32 %v1784_v9, %v4616_v6 }
0x1032   :  { %v4704_v12 = vadd.f32 %v3537_v4, %v1793_v11  ;;  %v1840_v13 = vsel %vm308_vm2, %v4701_v10, 0.0  ;;  %v1811_v11 = vld [vmem:[%s5024_s11 + $0x20] sm:$0xff] }
0x1033   :  { %1841 = vadd.xlane.f32.xlu1 %v1840_v13 }
0x1034   :  { %v1837_v5 = vsel %vm304_vm1, %v4704_v12, 0.0 }
0x1035   :  { %1838 = vadd.xlane.f32.xlu0 %v1837_v5 }
0x10bc   :  { %v1842_v14 = vpop.xlane.xlu1 %1841 }
0x10bd   :  { %v1844_v15 = vmul.f32 0.03125, %v1842_v14 }
0x10be   :  { %v1839_v16 = vpop.xlane.xlu0 %1838 }
0x10bf   :  { %v1846_v57 = vsub.f32 %v4701_v10, %v1844_v15  ;;  %v1843_v17 = vmul.f32 0.03125, %v1839_v16 }
0x10c1   :  { %v1845_v18 = vsub.f32 %v4704_v12, %v1843_v17  ;;  %v1848_v19 = vmul.f32 %v1846_v57, %v1846_v57 }
0x10c3   :  { %v1852_v6 = vsel %vm308_vm2, %v1848_v19, 0.0  ;;  %v1847_v20 = vmul.f32 %v1845_v18, %v1845_v18 }
0x10c4   :  { %1853 = vadd.xlane.f32.xlu1 %v1852_v6 }
0x10c5   :  { %v1849_v21 = vsel %vm304_vm1, %v1847_v20, 0.0 }
0x10c6   :  { %1850 = vadd.xlane.f32.xlu0 %v1849_v21 }
0x114d   :  { %v1854_v26 = vpop.xlane.xlu1 %1853 }
0x114e   :  { %v1856_v28 = vmul.f32 0.03125, %v1854_v26 }
0x114f   :  { %v1851_v30 = vpop.xlane.xlu0 %1850 }
0x1150   :  { %v1858_v31 = vadd.f32 1e-06, %v1856_v28  ;;  %v1855_v32 = vmul.f32 0.03125, %v1851_v30  ;;  %v4813_v28 = vld [vmem:[%s5018_s5 + $0x8] sm:$0x3] }
0x1152   :  { %4119 = vrsqrt.f32 %v1858_v31  ;;  %v1857_v35 = vadd.f32 1e-06, %v1855_v32  ;;  %v4819_v32 = vld [vmem:[%s5018_s5] sm:$0xff] }
0x1154   :  { %4121 = vrsqrt.f32 %v1857_v35 }
0x115f   :  { %v4120_v33 = vpop.eup %4119 }
0x1160   :  { %v1862_v38 = vmul.f32 %v4120_v33, %v1846_v57 }
0x1161   :  { %v4122_v39 = vpop.eup %4121 }
0x1162   :  { %v1861_v40 = vmul.f32 %v4122_v39, %v1845_v18  ;;  %v1868_v27 = vmul.f32 %v3538_v37, %v1862_v38 }
0x1164   :  { %v1867_v41 = vmul.f32 %v3538_v37, %v1861_v40  ;;  %v1874_v43 = vadd.f32 %v3539_v29, %v1868_v27 }
0x1166   :  { %v1873_v42 = vadd.f32 %v3539_v29, %v1867_v41 }
0x1168   :  { %3927 = vmatprep.mubr.msk.f32.mxu0 %vm304_vm1, %v1873_v42 }
0x1169   :  { %3928 = vmatmul.mubr.msk.f32.vlgmr.msra.gmra.mxu0 %vm304_vm1, %v1874_v43 }
0x1229   :  { %v3929_v45 = vpop.f32.mrf.mxu0 }
0x122a   :  { %v4737_v46 = vadd.f32 %v3929_v45, %v3540_v44 }
0x122b   :  { %v1951_v47 = vpop.f32.mrf.mxu0 }
0x122c   :  { %v4739_v48 = vadd.f32 %v3540_v44, %v1951_v47  ;;  %1966 = vrot.lane.b32.xlu0 %v4737_v46, %s4194_s24  ;;  %v4755_v52 = vmul.f32 0.35355338, %v4737_v46 }
0x122e   :  { %1964 = vrot.lane.b32.xlu1 %v4739_v48, %s4194_s24  ;;  %v4746_v49 = vmul.f32 0.35355338, %v4739_v48 }
0x1230   :  { %3934 = vmatprep.mubr.msk.f32.mxu0 %vm178_vm0, %v4746_v49 }
0x129e   :  { %v1967_v50 = vpop.permute.xlu0 %1966 }
0x129f   :  { %3930 = vmatprep.subr.msk.mxu0 %vm178_vm0, %v1967_v50 }
0x12a0   :  { %3931 = vmatpush3.xpose.msk.msra.mxu0 %vm178_vm0, %v1967_v50  ;;  %v1965_v51 = vpop.permute.xlu1 %1964 }
0x12a1   :  { %3932 = vmatprep.subr.msk.mxu0 %vm178_vm0, %v1965_v51 }
0x12a4   :  { %3933 = vmatpush3.xpose.msk.msra.mxu0 %vm178_vm0, %v1965_v51 }
0x12a7   :  { %3935 = vmatmul.mubr.msk.f32.vlgmr.msra.gmra.mxu0 %vm178_vm0, %v4755_v52 }
0x1367   :  { %v3936_v53 = vpop.f32.mrf.mxu0 }
0x1368   :  { %v2050_v54 = vadd.f32 %v3936_v53, %v4471_v34 }
0x1369   :  { %v2044_v58 = vpop.f32.mrf.mxu0 }
0x136a   :  { %v2045_v59 = vadd.f32 %v2044_v58, %v4476_v36  ;;  %v2056_v60 = vsel %vm527_vm3, %v2050_v54, -inf }
0x136b   :  { %2057 = vmax.xlane.f32.xlu0 %v2056_v60 }
0x136c   :  { %v2053_v61 = vsel %vm523_vm4, %v2045_v59, -inf }
0x136d   :  { %2054 = vmax.xlane.f32.xlu1 %v2053_v61 }
0x13f4   :  { %v2058_v62 = vpop.xlane.xlu0 %2057 }
0x13f5   :  { %v2060_v63 = vsub.f32 %v2050_v54, %v2058_v62 }
0x13f6   :  { %v2055_v0 = vpop.xlane.xlu1 %2054 }
0x13f7   :  { %v2063_v1 = vmul.f32 1.442695, %v2060_v63  ;;  %v2059_v56 = vsub.f32 %v2045_v59, %v2055_v0 }
0x13f9   :  { %4123 = vpow2.f32 %v2063_v1  ;;  %v2061_v2 = vmul.f32 1.442695, %v2059_v56 }
0x13fb   :  { %4125 = vpow2.f32 %v2061_v2 }
0x1406   :  { %v4124_v55 = vpop.eup %4123 }
0x1407   :  { %v2068_v34 = vsel %vm527_vm3, %v4124_v55, 0.0 }
0x1408   :  { %v4126_v3 = vpop.eup %4125  ;;  %2069 = vadd.xlane.f32.xlu1 %v2068_v34 }
0x1409   :  { %v2065_v36 = vsel %vm523_vm4, %v4126_v3, 0.0 }
0x140a   :  { %2066 = vadd.xlane.f32.xlu0 %v2065_v36 }
0x1419   :  { %2075 = vrot.lane.b32.xlu1 %v4739_v48, %s4195_s3 }
0x141d   :  { %2256 = vrot.lane.b32.xlu1 %v4737_v46, %s4196_s28 }
0x1420   :  { %2077 = vrot.lane.b32.xlu0 %v4737_v46, %s4195_s3 }
0x1421   :  { %2250 = vrot.lane.b32.xlu1 %v4746_v49, %s4197_s4 }
0x1424   :  { %2254 = vrot.lane.b32.xlu0 %v4739_v48, %s4196_s28 }
0x1425   :  { %2540 = vrot.lane.b32.xlu1 %v4737_v46, %s4199_s16 }
0x1428   :  { %2252 = vrot.lane.b32.xlu0 %v4755_v52, %s4197_s4 }
0x1429   :  { %2534 = vrot.lane.b32.xlu1 %v4746_v49, %s4200_s17 }
0x142c   :  { %2538 = vrot.lane.b32.xlu0 %v4739_v48, %s4199_s16 }
0x1430   :  { %2536 = vrot.lane.b32.xlu0 %v4755_v52, %s4200_s17 }
0x1491   :  { %v2070_v4 = vpop.xlane.xlu1 %2069 }
0x1492   :  { %4127 = vrcp.f32 %v2070_v4 }
0x1493   :  { %v2067_v7 = vpop.xlane.xlu0 %2066 }
0x1494   :  { %4129 = vrcp.f32 %v2067_v7 }
0x1495   :  { %v2076_v9 = vpop.permute.xlu1 %2075 }
0x1497   :  { %v2078_v8 = vpop.permute.xlu0 %2077 }
0x1498   :  { %3937 = vmatprep.subr.msk.mxu0 %vm558_vm5, %v2078_v8 }
0x1499   :  { %3938 = vmatpush3.msk.msra.mxu0 %vm558_vm5, %v2078_v8  ;;  %v2257_v16 = vpop.permute.xlu1 %2256 }
0x149a   :  { %3939 = vmatprep.subr.mxu0 %v2076_v9 }
0x149b   :  { %3940 = vmatpush3.msra.mxu0 %v2076_v9  ;;  %v2255_v18 = vpop.permute.xlu0 %2254 }
0x149c   :  { %3944 = vmatprep.subr.mxu0 %v1811_v11 }
0x149d   :  { %v2251_v57 = vpop.permute.xlu1 %2250 }
0x149f   :  { %v4128_v13 = vpop.eup %4127  ;;  %v2253_v20 = vpop.permute.xlu0 %2252 }
0x14a0   :  { %v2074_v15 = vmul.f32 %v4128_v13, %v4124_v55 }
0x14a1   :  { %v4130_v5 = vpop.eup %4129  ;;  %v2541_v6 = vpop.permute.xlu1 %2540 }
0x14a2   :  { %v2073_v14 = vmul.f32 %v4130_v5, %v4126_v3 }
0x14a3   :  { %v2539_v22 = vpop.permute.xlu0 %2538 }
0x14a4   :  { %3941 = vmatprep.mubr.msk.f32.mxu0 %vm523_vm4, %v2073_v14  ;;  %v1812_v14 = vld [vmem:[%s5024_s11 + $0x28] sm:$0xff] }
0x14a5   :  { %3942 = vmatmul.mubr.msk.f32.vlgmr.msra.gmra.mxu0 %vm523_vm4, %v2074_v15  ;;  %v2535_v21 = vpop.permute.xlu1 %2534 }
0x14a6   :  { %3945 = vmatpush3.msra.mxu0 %v1811_v11 }
0x14a7   :  { %3949 = vmatprep.subr.msk.mxu0 %vm178_vm0, %v2257_v16  ;;  %v2537_v23 = vpop.permute.xlu0 %2536 }
0x1565   :  { %v3943_v17 = vpop.f32.mrf.mxu0 }
0x1567   :  { %v2154_v19 = vpop.f32.mrf.mxu0 }
0x1568   :  { %3946 = vmatprep.mubr.msk.f32.mxu0 %vm178_vm0, %v2154_v19 }
0x1569   :  { %3947 = vmatmul.mubr.msk.f32.vlgmr.msra.gmra.mxu0 %vm178_vm0, %v3943_v17 }
0x156a   :  { %3950 = vmatpush3.xpose.msk.msra.mxu0 %vm178_vm0, %v2257_v16  ;;  %3953 = vmatprep.mubr.msk.f32.mxu0 %vm178_vm0, %v2251_v57 }
0x156b   :  { %3951 = vmatprep.subr.msk.mxu0 %vm178_vm0, %v2255_v18 }
0x156e   :  { %3952 = vmatpush3.xpose.msk.msra.mxu0 %vm178_vm0, %v2255_v18 }
0x156f   :  { %3968 = vmatprep.subr.msk.mxu0 %vm178_vm0, %v2541_v6 }
0x1571   :  { %3954 = vmatmul.mubr.msk.f32.vlgmr.msra.gmra.mxu0 %vm178_vm0, %v2253_v20 }
0x1572   :  { %3969 = vmatpush3.xpose.msk.msra.mxu0 %vm178_vm0, %v2541_v6  ;;  %3972 = vmatprep.mubr.msk.f32.mxu0 %vm178_vm0, %v2535_v21 }
0x1573   :  { %3970 = vmatprep.subr.msk.mxu0 %vm178_vm0, %v2539_v22 }
0x1576   :  { %3971 = vmatpush3.xpose.msk.msra.mxu0 %vm178_vm0, %v2539_v22 }
0x1579   :  { %3973 = vmatmul.mubr.msk.f32.vlgmr.msra.gmra.mxu0 %vm178_vm0, %v2537_v23 }
0x1629   :  { %v4806_v24 = vpop.f32.mrf.mxu0 }
0x162b   :  { %v4808_v25 = vpop.f32.mrf.mxu0 }
0x1631   :  { %v3955_v26 = vpop.f32.mrf.mxu0 }
0x1632   :  { %v2338_v30 = vadd.f32 %v4813_v28, %v3955_v26 }
0x1633   :  { %v2332_v31 = vpop.f32.mrf.mxu0 }
0x1634   :  { %v2333_v35 = vadd.f32 %v4819_v32, %v2332_v31  ;;  %v2344_v33 = vsel %vm527_vm3, %v2338_v30, -inf }
0x1635   :  { %2345 = vmax.xlane.f32.xlu0 %v2344_v33 }
0x1636   :  { %v2341_v37 = vsel %vm523_vm4, %v2333_v35, -inf }
0x1637   :  { %2342 = vmax.xlane.f32.xlu1 %v2341_v37 }
0x1639   :  { %v3974_v47 = vpop.f32.mrf.mxu0 }
0x163a   :  { %v2622_v53 = vadd.f32 %v4813_v28, %v3974_v47 }
0x163b   :  { %v2616_v50 = vpop.f32.mrf.mxu0 }
0x163c   :  { %v2617_v51 = vadd.f32 %v4819_v32, %v2616_v50  ;;  %v2628_v58 = vsel %vm527_vm3, %v2622_v53, -inf }
0x163e   :  { %v2625_v54 = vsel %vm523_vm4, %v2617_v51, -inf }
0x16be   :  { %v2346_v38 = vpop.xlane.xlu0 %2345 }
0x16bf   :  { %v2348_v39 = vsub.f32 %v2338_v30, %v2346_v38 }
0x16c0   :  { %v2343_v40 = vpop.xlane.xlu1 %2342 }
0x16c1   :  { %v2351_v27 = vmul.f32 1.442695, %v2348_v39  ;;  %v2347_v29 = vsub.f32 %v2333_v35, %v2343_v40  ;;  %v1813_v35 = vld [vmem:[%s5024_s11 + $0x30] sm:$0xff] }
0x16c3   :  { %4131 = vpow2.f32 %v2351_v27  ;;  %v2349_v41 = vmul.f32 1.442695, %v2347_v29 }
0x16c5   :  { %4133 = vpow2.f32 %v2349_v41 }
0x16d0   :  { %v4132_v42 = vpop.eup %4131 }
0x16d1   :  { %v2356_v43 = vsel %vm527_vm3, %v4132_v42, 0.0 }
0x16d2   :  { %v4134_v44 = vpop.eup %4133  ;;  %2357 = vadd.xlane.f32.xlu1 %v2356_v43 }
0x16d3   :  { %v2353_v45 = vsel %vm523_vm4, %v4134_v44, 0.0 }
0x16d4   :  { %2354 = vadd.xlane.f32.xlu0 %v2353_v45 }
0x16e3   :  { %2363 = vrot.lane.b32.xlu1 %v4739_v48, %s4198_s15 }
0x16e7   :  { %2824 = vrot.lane.b32.xlu1 %v4737_v46, %s4201_s18 }
0x16ea   :  { %2365 = vrot.lane.b32.xlu0 %v4737_v46, %s4198_s15 }
0x16eb   :  { %2818 = vrot.lane.b32.xlu1 %v4746_v49, %s4202_s19 }
0x16ee   :  { %2822 = vrot.lane.b32.xlu0 %v4739_v48, %s4201_s18 }
0x16f2   :  { %2820 = vrot.lane.b32.xlu0 %v4755_v52, %s4202_s19 }
0x170f   :  { %2626 = vmax.xlane.f32.xlu1 %v2625_v54 }
0x1711   :  { %2629 = vmax.xlane.f32.xlu0 %v2628_v58 }
0x175b   :  { %v2358_v59 = vpop.xlane.xlu1 %2357 }
0x175c   :  { %4135 = vrcp.f32 %v2358_v59 }
0x175d   :  { %v2355_v49 = vpop.xlane.xlu0 %2354 }
0x175e   :  { %4137 = vrcp.f32 %v2355_v49 }
0x175f   :  { %v2364_v60 = vpop.permute.xlu1 %2363 }
0x1761   :  { %v2366_v61 = vpop.permute.xlu0 %2365 }
0x1762   :  { %3956 = vmatprep.subr.msk.mxu1 %vm558_vm5, %v2366_v61 }
0x1763   :  { %3957 = vmatpush3.msk.msra.mxu1 %vm558_vm5, %v2366_v61  ;;  %v2825_v52 = vpop.permute.xlu1 %2824 }
0x1764   :  { %3958 = vmatprep.subr.mxu1 %v2364_v60  ;;  %3987 = vmatprep.subr.msk.mxu0 %vm178_vm0, %v2825_v52 }
0x1765   :  { %v2823_v62 = vpop.permute.xlu0 %2822  ;;  %3959 = vmatpush3.msra.mxu1 %v2364_v60  ;;  %3988 = vmatpush3.xpose.msk.msra.mxu0 %vm178_vm0, %v2825_v52 }
0x1766   :  { %3989 = vmatprep.subr.msk.mxu0 %vm178_vm0, %v2823_v62  ;;  %3963 = vmatprep.subr.mxu1 %v1812_v14 }
0x1767   :  { %v2819_v63 = vpop.permute.xlu1 %2818 }
0x1768   :  { %3991 = vmatprep.mubr.msk.f32.mxu0 %vm178_vm0, %v2819_v63 }
0x1769   :  { %3990 = vmatpush3.xpose.msk.msra.mxu0 %vm178_vm0, %v2823_v62  ;;  %v4136_v0 = vpop.eup %4135  ;;  %v2821_v56 = vpop.permute.xlu0 %2820  ;;  %v1814_v62 = vld [vmem:[%s5024_s11 + $0x38] sm:$0xff] }
0x176a   :  { %v2362_v55 = vmul.f32 %v4136_v0, %v4132_v42 }
0x176b   :  { %v4138_v1 = vpop.eup %4137 }
0x176c   :  { %3992 = vmatmul.mubr.msk.f32.vlgmr.msra.gmra.mxu0 %vm178_vm0, %v2821_v56  ;;  %v2361_v2 = vmul.f32 %v4138_v1, %v4134_v44  ;;  %v3552_v44 = vld [vmem:[%s5020_s7 + $0xe] ss:$0 sm:$0xff] }
0x176d   :  { %v2249_v45 = vadd.f32 %v4806_v24, %v3552_v44  ;;  %v2248_v50 = vadd.f32 %v3552_v44, %v4808_v25  ;;  %v1832_v44 = vld [vmem:[%s5026_s13 + $0xe8] sm:$0xff] }
0x176e   :  { %3960 = vmatprep.mubr.msk.f32.mxu1 %vm523_vm4, %v2361_v2 }
0x176f   :  { %3961 = vmatmul.mubr.msk.f32.vlgmr.msra.gmra.mxu1 %vm523_vm4, %v2362_v55 }
0x1770   :  { %3964 = vmatpush3.msra.mxu1 %v1812_v14 }
0x1798   :  { %v2627_v34 = vpop.xlane.xlu1 %2626 }
0x1799   :  { %v2631_v3 = vsub.f32 %v2617_v51, %v2627_v34 }
0x179a   :  { %v2630_v36 = vpop.xlane.xlu0 %2629 }
0x179b   :  { %v2633_v4 = vmul.f32 1.442695, %v2631_v3  ;;  %v2632_v7 = vsub.f32 %v2622_v53, %v2630_v36 }
0x179d   :  { %4139 = vpow2.f32 %v2633_v4  ;;  %v2635_v8 = vmul.f32 1.442695, %v2632_v7 }
0x179f   :  { %4141 = vpow2.f32 %v2635_v8 }
0x17aa   :  { %v4140_v9 = vpop.eup %4139 }
0x17ab   :  { %v2637_v11 = vsel %vm523_vm4, %v4140_v9, 0.0 }
0x17ac   :  { %v4142_v13 = vpop.eup %4141  ;;  %2638 = vadd.xlane.f32.xlu0 %v2637_v11 }
0x17ad   :  { %v2640_v5 = vsel %vm527_vm3, %v4142_v13, 0.0 }
0x17ae   :  { %2641 = vadd.xlane.f32.xlu1 %v2640_v5 }
0x17bf   :  { %2647 = vrot.lane.b32.xlu1 %v4739_v48, %s4203_s21 }
0x17c2   :  { %2649 = vrot.lane.b32.xlu0 %v4737_v46, %s4203_s21 }
0x182c   :  { %v3993_v15 = vpop.f32.mrf.mxu0 }
0x182d   :  { %v2906_v16 = vadd.f32 %v4813_v28, %v3993_v15 }
0x182e   :  { %v2900_v57 = vpop.f32.mrf.mxu0 }
0x182f   :  { %v2901_v17 = vadd.f32 %v4819_v32, %v2900_v57  ;;  %v3962_v18 = vpop.f32.mrf.mxu1  ;;  %v2912_v19 = vsel %vm527_vm3, %v2906_v16, -inf }
0x1830   :  { %2913 = vmax.xlane.f32.xlu0 %v2912_v19  ;;  %v1818_v19 = vld [vmem:[%s5025_s12 + $0x38] sm:$0xff] }
0x1831   :  { %v2442_v6 = vpop.f32.mrf.mxu1  ;;  %v2909_v20 = vsel %vm523_vm4, %v2901_v17, -inf  ;;  %4006 = vmatprep.subr.mxu0 %v1818_v19 }
0x1832   :  { %3965 = vmatprep.mubr.msk.f32.mxu1 %vm178_vm0, %v2442_v6  ;;  %2910 = vmax.xlane.f32.xlu1 %v2909_v20  ;;  %v1817_v6 = vld [vmem:[%s5025_s12 + $0x30] sm:$0xff]  ;;  %v1816_v20 = vld [vmem:[%s5025_s12 + $0x28] sm:$0xff] }
0x1833   :  { %3966 = vmatmul.mubr.msk.f32.vlgmr.msra.gmra.mxu1 %vm178_vm0, %v3962_v18  ;;  %4007 = vmatpush3.msra.mxu0 %v1818_v19 }
0x1834   :  { %4008 = vmatprep.subr.mxu0 %v1817_v6 }
0x1835   :  { %v2639_v21 = vpop.xlane.xlu0 %2638  ;;  %4009 = vmatpush3.msra.mxu0 %v1817_v6 }
0x1836   :  { %4143 = vrcp.f32 %v2639_v21  ;;  %v1815_v21 = vld [vmem:[%s5025_s12 + $0x20] sm:$0xff]  ;;  %4010 = vmatprep.subr.mxu0 %v1816_v20 }
0x1837   :  { %v2642_v22 = vpop.xlane.xlu1 %2641  ;;  %4011 = vmatpush3.msra.mxu0 %v1816_v20 }
0x1838   :  { %4145 = vrcp.f32 %v2642_v22  ;;  %4012 = vmatprep.subr.mxu0 %v1815_v21 }
0x1839   :  { %v2650_v23 = vpop.permute.xlu0 %2649  ;;  %4013 = vmatpush3.msra.mxu0 %v1815_v21 }
0x183a   :  { %3975 = vmatprep.subr.msk.mxu1 %vm558_vm5, %v2650_v23 }
0x183b   :  { %3976 = vmatpush3.msk.msra.mxu1 %vm558_vm5, %v2650_v23  ;;  %v2648_v26 = vpop.permute.xlu1 %2647 }
0x183c   :  { %3977 = vmatprep.subr.mxu1 %v2648_v26 }
0x183d   :  { %3978 = vmatpush3.msra.mxu1 %v2648_v26 }
0x183e   :  { %3982 = vmatprep.subr.mxu1 %v1813_v35 }
0x1843   :  { %v4144_v28 = vpop.eup %4143 }
0x1844   :  { %v2645_v30 = vmul.f32 %v4144_v28, %v4140_v9 }
0x1845   :  { %v4146_v31 = vpop.eup %4145 }
0x1846   :  { %3979 = vmatprep.mubr.msk.f32.mxu1 %vm523_vm4, %v2645_v30  ;;  %v2646_v32 = vmul.f32 %v4146_v31, %v4142_v13 }
0x1848   :  { %3980 = vmatmul.mubr.msk.f32.vlgmr.msra.gmra.mxu1 %vm523_vm4, %v2646_v32 }
0x1849   :  { %3983 = vmatpush3.msra.mxu1 %v1813_v35  ;;  %v3580_v35 = vld [vmem:[%s5020_s7 + $0xf] ss:$0 sm:$0xff] }
0x18b9   :  { %v2914_v33 = vpop.xlane.xlu0 %2913 }
0x18ba   :  { %v2916_v37 = vsub.f32 %v2906_v16, %v2914_v33 }
0x18bb   :  { %v2911_v38 = vpop.xlane.xlu1 %2910 }
0x18bc   :  { %v2919_v39 = vmul.f32 1.442695, %v2916_v37  ;;  %v2915_v40 = vsub.f32 %v2901_v17, %v2911_v38 }
0x18be   :  { %4147 = vpow2.f32 %v2919_v39  ;;  %v2917_v27 = vmul.f32 1.442695, %v2915_v40  ;;  %v3581_v40 = vld [vmem:[%s5020_s7 + $0x10] ss:$0 sm:$0xff] }
0x18c0   :  { %4149 = vpow2.f32 %v2917_v27 }
0x18cb   :  { %v4148_v29 = vpop.eup %4147 }
0x18cc   :  { %v2924_v41 = vsel %vm527_vm3, %v4148_v29, 0.0 }
0x18cd   :  { %v4150_v42 = vpop.eup %4149  ;;  %2925 = vadd.xlane.f32.xlu1 %v2924_v41 }
0x18ce   :  { %v2921_v43 = vsel %vm523_vm4, %v4150_v42, 0.0 }
0x18cf   :  { %2922 = vadd.xlane.f32.xlu0 %v2921_v43  ;;  %v1833_v43 = vld [vmem:[%s5026_s13 + $0xf0] sm:$0xff] }
0x18de   :  { %2931 = vrot.lane.b32.xlu1 %v4739_v48, %s4204_s2 }
0x18e5   :  { %2933 = vrot.lane.b32.xlu0 %v4737_v46, %s4204_s2 }
0x18f3   :  { %v3967_v47 = vpop.f32.mrf.mxu1 }
0x18f4   :  { %v2533_v51 = vadd.f32 %v3967_v47, %v2249_v45  ;;  %v1831_v45 = vld [vmem:[%s5026_s13 + $0xe0] sm:$0xff]  ;;  %v1830_v47 = vld [vmem:[%s5026_s13 + $0xd8] sm:$0xff] }
0x18f5   :  { %v2523_v53 = vpop.f32.mrf.mxu1 }
0x18f6   :  { %v2532_v54 = vadd.f32 %v2523_v53, %v2248_v50  ;;  %v1829_v50 = vld [vmem:[%s5026_s13 + $0xd0] sm:$0xff]  ;;  %v1827_v53 = vld [vmem:[%s5026_s13 + $0xc0] sm:$0xff] }
0x1908   :  { %v3981_v58 = vpop.f32.mrf.mxu1 }
0x190a   :  { %v2726_v59 = vpop.f32.mrf.mxu1 }
0x190b   :  { %3984 = vmatprep.mubr.msk.f32.mxu1 %vm178_vm0, %v2726_v59  ;;  %v1824_v59 = vld [vmem:[%s5026_s13 + $0xa8] sm:$0xff] }
0x190c   :  { %3985 = vmatmul.mubr.msk.f32.vlgmr.msra.gmra.mxu1 %vm178_vm0, %v3981_v58  ;;  %v1825_v58 = vld [vmem:[%s5026_s13 + $0xb0] sm:$0xff] }
0x1956   :  { %v2926_v48 = vpop.xlane.xlu1 %2925 }
0x1957   :  { %4151 = vrcp.f32 %v2926_v48  ;;  %v1823_v48 = vld [vmem:[%s5026_s13 + $0xa0] sm:$0xff] }
0x1958   :  { %v2923_v46 = vpop.xlane.xlu0 %2922 }
0x1959   :  { %4153 = vrcp.f32 %v2923_v46  ;;  %v1822_v46 = vld [vmem:[%s5026_s13 + $0x98] sm:$0xff] }
0x195a   :  { %v2932_v24 = vpop.permute.xlu1 %2931 }
0x195c   :  { %v2934_v49 = vpop.permute.xlu0 %2933 }
0x195d   :  { %3994 = vmatprep.subr.msk.mxu1 %vm558_vm5, %v2934_v49 }
0x195e   :  { %3995 = vmatpush3.msk.msra.mxu1 %vm558_vm5, %v2934_v49  ;;  %v1821_v49 = vld [vmem:[%s5026_s13 + $0x90] sm:$0xff] }
0x195f   :  { %3996 = vmatprep.subr.mxu1 %v2932_v24 }
0x1960   :  { %3997 = vmatpush3.msra.mxu1 %v2932_v24  ;;  %v1820_v24 = vld [vmem:[%s5026_s13 + $0x88] sm:$0xff] }
0x1961   :  { %4001 = vmatprep.subr.mxu1 %v1814_v62 }
0x1964   :  { %v4152_v25 = vpop.eup %4151 }
0x1965   :  { %v2930_v52 = vmul.f32 %v4152_v25, %v4148_v29  ;;  %v1819_v25 = vld [vmem:[%s5026_s13 + $0x80] sm:$0xff] }
0x1966   :  { %v4154_v60 = vpop.eup %4153 }
0x1967   :  { %v2929_v61 = vmul.f32 %v4154_v60, %v4150_v42  ;;  %v1834_v42 = vld [vmem:[%s5026_s13 + $0xf8] sm:$0xff]  ;;  %v3582_v60 = vld [vmem:[%s5022_s9 + $0x1] ss:$0 sm:$0xff] }
0x1969   :  { %3998 = vmatprep.mubr.msk.f32.mxu1 %vm523_vm4, %v2929_v61 }
0x196a   :  { %3999 = vmatmul.mubr.msk.f32.vlgmr.msra.gmra.mxu1 %vm523_vm4, %v2930_v52 }
0x196b   :  { %4002 = vmatpush3.msra.mxu1 %v1814_v62 }
0x196c   :  { %4017 = vmatprep.subr.mxu1 %v1834_v42 }
0x19cc   :  { %v3986_v63 = vpop.f32.mrf.mxu1 }
0x19cd   :  { %v2817_v0 = vadd.f32 %v3986_v63, %v2533_v51  ;;  %v1828_v51 = vld [vmem:[%s5026_s13 + $0xc8] sm:$0xff] }
0x19ce   :  { %v2807_v1 = vpop.f32.mrf.mxu1 }
0x19cf   :  { %v2816_v34 = vadd.f32 %v2807_v1, %v2532_v54  ;;  %v1826_v54 = vld [vmem:[%s5026_s13 + $0xb8] sm:$0xff] }
0x1a2a   :  { %v4000_v56 = vpop.f32.mrf.mxu1 }
0x1a2c   :  { %v3010_v2 = vpop.f32.mrf.mxu1 }
0x1a2d   :  { %4003 = vmatprep.mubr.msk.f32.mxu1 %vm178_vm0, %v3010_v2 }
0x1a2e   :  { %4004 = vmatmul.mubr.msk.f32.vlgmr.msra.gmra.mxu1 %vm178_vm0, %v4000_v56 }
0x1a2f   :  { %4018 = vmatpush3.msra.mxu1 %v1834_v42 }
0x1a30   :  { %4019 = vmatprep.subr.mxu1 %v1833_v43 }
0x1a31   :  { %4020 = vmatpush3.msra.mxu1 %v1833_v43 }
0x1a32   :  { %4021 = vmatprep.subr.mxu1 %v1832_v44 }
0x1a33   :  { %4022 = vmatpush3.msra.mxu1 %v1832_v44  ;;  %v3586_v44 = vld [vmem:[%s5020_s7 + $0x2] ss:$0 sm:$0xff] }
0x1a34   :  { %4023 = vmatprep.subr.mxu1 %v1831_v45 }
0x1a35   :  { %4024 = vmatpush3.msra.mxu1 %v1831_v45 }
0x1a36   :  { %4025 = vmatprep.subr.mxu1 %v1830_v47 }
0x1a37   :  { %4026 = vmatpush3.msra.mxu1 %v1830_v47 }
0x1a38   :  { %4027 = vmatprep.subr.mxu1 %v1829_v50 }
0x1a39   :  { %4028 = vmatpush3.msra.mxu1 %v1829_v50  ;;  %v3587_v50 = vld [vmem:[%s5020_s7 + $0x3] ss:$0 sm:$0xff] }
0x1a3a   :  { %4029 = vmatprep.subr.mxu1 %v1828_v51 }
0x1a3b   :  { %4030 = vmatpush3.msra.mxu1 %v1828_v51 }
0x1a3c   :  { %4031 = vmatprep.subr.mxu1 %v1827_v53 }
0x1a3d   :  { %4032 = vmatpush3.msra.mxu1 %v1827_v53 }
0x1a3e   :  { %4033 = vmatprep.subr.mxu1 %v1826_v54 }
0x1a3f   :  { %4034 = vmatpush3.msra.mxu1 %v1826_v54 }
0x1a40   :  { %4035 = vmatprep.subr.mxu1 %v1825_v58 }
0x1a41   :  { %4036 = vmatpush3.msra.mxu1 %v1825_v58 }
0x1a42   :  { %4037 = vmatprep.subr.mxu1 %v1824_v59 }
0x1a43   :  { %4038 = vmatpush3.msra.mxu1 %v1824_v59 }
0x1a44   :  { %4039 = vmatprep.subr.mxu1 %v1823_v48 }
0x1a45   :  { %4040 = vmatpush3.msra.mxu1 %v1823_v48  ;;  %v3368_v48 = vld [vmem:[%s5019_s6] sm:$0x3] }
0x1a46   :  { %4041 = vmatprep.subr.mxu1 %v1822_v46 }
0x1a47   :  { %4042 = vmatpush3.msra.mxu1 %v1822_v46 }
0x1a48   :  { %4043 = vmatprep.subr.mxu1 %v1821_v49 }
0x1a49   :  { %4044 = vmatpush3.msra.mxu1 %v1821_v49 }
0x1a4a   :  { %4045 = vmatprep.subr.mxu1 %v1820_v24 }
0x1a4b   :  { %4046 = vmatpush3.msra.mxu1 %v1820_v24 }
0x1a4c   :  { %4047 = vmatprep.subr.mxu1 %v1819_v25 }
0x1a4d   :  { %4048 = vmatpush3.msra.mxu1 %v1819_v25 }
0x1aee   :  { %v4005_v55 = vpop.f32.mrf.mxu1 }
0x1aef   :  { %v3101_v3 = vadd.f32 %v4005_v55, %v2817_v0 }
0x1af0   :  { %v3091_v36 = vpop.f32.mrf.mxu1 }
0x1af1   :  { %v4897_v4 = vadd.f32 %v3101_v3, %v4701_v10  ;;  %v3100_v7 = vadd.f32 %v3091_v36, %v2816_v34 }
0x1af3   :  { %v4900_v8 = vadd.f32 %v3100_v7, %v4704_v12  ;;  %v3107_v9 = vsel %vm308_vm2, %v4897_v4, 0.0 }
0x1af4   :  { %3108 = vadd.xlane.f32.xlu0 %v3107_v9 }
0x1af5   :  { %v3104_v11 = vsel %vm304_vm1, %v4900_v8, 0.0 }
0x1af6   :  { %3105 = vadd.xlane.f32.xlu1 %v3104_v11 }
0x1b7d   :  { %v3109_v13 = vpop.xlane.xlu0 %3108 }
0x1b7e   :  { %v3111_v5 = vmul.f32 0.03125, %v3109_v13 }
0x1b7f   :  { %v3106_v14 = vpop.xlane.xlu1 %3105 }
0x1b80   :  { %v3113_v15 = vsub.f32 %v4897_v4, %v3111_v5  ;;  %v3110_v16 = vmul.f32 0.03125, %v3106_v14 }
0x1b82   :  { %v3112_v10 = vsub.f32 %v4900_v8, %v3110_v16  ;;  %v3115_v57 = vmul.f32 %v3113_v15, %v3113_v15 }
0x1b84   :  { %v3119_v12 = vsel %vm308_vm2, %v3115_v57, 0.0  ;;  %v3114_v17 = vmul.f32 %v3112_v10, %v3112_v10 }
0x1b85   :  { %3120 = vadd.xlane.f32.xlu1 %v3119_v12  ;;  %v3585_v12 = vld [vmem:[%s5020_s7 + $0x11] ss:$0 sm:$0xff] }
0x1b86   :  { %v3116_v18 = vsel %vm304_vm1, %v3114_v17, 0.0 }
0x1b87   :  { %3117 = vadd.xlane.f32.xlu0 %v3116_v18 }
0x1c0e   :  { %v3121_v22 = vpop.xlane.xlu1 %3120 }
0x1c0f   :  { %v3123_v23 = vmul.f32 0.03125, %v3121_v22 }
0x1c10   :  { %v3118_v26 = vpop.xlane.xlu0 %3117 }
0x1c11   :  { %v3125_v28 = vadd.f32 1e-06, %v3123_v23  ;;  %v3122_v30 = vmul.f32 0.03125, %v3118_v26 }
0x1c13   :  { %4155 = vrsqrt.f32 %v3125_v28  ;;  %v3124_v31 = vadd.f32 1e-06, %v3122_v30 }
0x1c15   :  { %4157 = vrsqrt.f32 %v3124_v31 }
0x1c20   :  { %v4156_v32 = vpop.eup %4155 }
0x1c21   :  { %v3129_v33 = vmul.f32 %v4156_v32, %v3113_v15 }
0x1c22   :  { %v4158_v37 = vpop.eup %4157 }
0x1c23   :  { %v3128_v38 = vmul.f32 %v4158_v37, %v3112_v10  ;;  %v3135_v39 = vmul.f32 %v3580_v35, %v3129_v33 }
0x1c25   :  { %v3134_v27 = vmul.f32 %v3580_v35, %v3128_v38  ;;  %v3141_v41 = vadd.f32 %v3581_v40, %v3135_v39  ;;  %v4205_v38 = vmov 0.0  }
0x1c26   :  { %4052 = vmatprep.subr.mxu0 %v4205_v38 }
0x1c27   :  { %v3140_v29 = vadd.f32 %v3581_v40, %v3134_v27 }
0x1c29   :  { %4014 = vmatprep.mubr.msk.f32.mxu0 %vm304_vm1, %v3140_v29 }
0x1c2a   :  { %4015 = vmatmul.mubr.msk.f32.vlgmr.msra.gmra.mxu0 %vm304_vm1, %v3141_v41 }
0x1c2b   :  { %4056 = vmatprep.mubr.msk.f32.mxu0 %vm4206_vm6, %v4205_v38 }
0x1cea   :  { %v4016_v61 = vpop.f32.mrf.mxu0 }
0x1ceb   :  { %v3224_v52 = vadd.f32 %v4016_v61, %v3582_v60 }
0x1cec   :  { %v3218_v62 = vpop.f32.mrf.mxu0 }
0x1ced   :  { %v3228_v63 = vmul.f32 %v3224_v52, %v3224_v52  ;;  %v3219_v0 = vadd.f32 %v3582_v60, %v3218_v62 }
0x1cef   :  { %v3230_v1 = vmul.f32 %v3228_v63, %v3224_v52  ;;  %v3227_v56 = vmul.f32 %v3219_v0, %v3219_v0 }
0x1cf1   :  { %v3232_v2 = vmul.f32 0.044715, %v3230_v1  ;;  %v3229_v55 = vmul.f32 %v3227_v56, %v3219_v0 }
0x1cf3   :  { %v3234_v34 = vadd.f32 %v3232_v2, %v3224_v52  ;;  %v3231_v3 = vmul.f32 0.044715, %v3229_v55  ;;  %v3590_v55 = vld [vmem:[%s5020_s7 + $0x4] ss:$0 sm:$0xff] }
0x1cf5   :  { %v3236_v36 = vmul.f32 0.7978846, %v3234_v34  ;;  %v3233_v7 = vadd.f32 %v3231_v3, %v3219_v0  ;;  %v3591_v3 = vld [vmem:[%s5020_s7 + $0x5] ss:$0 sm:$0xff] }
0x1cf7   :  { %4159 = vtanh.f32 %v3236_v36  ;;  %v3235_v9 = vmul.f32 0.7978846, %v3233_v7 }
0x1cf9   :  { %4161 = vtanh.f32 %v3235_v9 }
0x1d04   :  { %v4160_v11 = vpop.eup %4159 }
0x1d05   :  { %v3240_v13 = vadd.f32 1.0, %v4160_v11 }
0x1d06   :  { %v4162_v5 = vpop.eup %4161 }
0x1d07   :  { %v3239_v14 = vadd.f32 1.0, %v4162_v5  ;;  %v3242_v15 = vmul.f32 0.5, %v3240_v13 }
0x1d09   :  { %v3241_v16 = vmul.f32 0.5, %v3239_v14  ;;  %v3244_v57 = vmul.f32 %v3242_v15, %v3224_v52 }
0x1d0b   :  { %v3243_v10 = vmul.f32 %v3241_v16, %v3219_v0 }
0x1d0d   :  { %4049 = vmatprep.mubr.f32.mxu1 %v3243_v10 }
0x1d0e   :  { %4050 = vmatmul.mubr.f32.vlgmr.msra.gmra.mxu1 %v3244_v57 }
0x1dce   :  { %v4051_v17 = vpop.f32.mrf.mxu1 }
0x1dcf   :  { %v3321_v18 = vadd.f32 %v4051_v17, %v4897_v4 }
0x1dd0   :  { %v3311_v19 = vpop.f32.mrf.mxu1 }
0x1dd1   :  { %v3327_v6 = vadd.f32 %v3585_v12, %v3321_v18  ;;  %v3320_v20 = vadd.f32 %v3311_v19, %v4900_v8 }
0x1dd3   :  { %v3333_v21 = vsel %vm308_vm2, %v3327_v6, 0.0  ;;  %v3326_v22 = vadd.f32 %v3585_v12, %v3320_v20 }
0x1dd4   :  { %3334 = vadd.xlane.f32.xlu0 %v3333_v21 }
0x1dd5   :  { %v3330_v23 = vsel %vm304_vm1, %v3326_v22, 0.0 }
0x1dd6   :  { %3331 = vadd.xlane.f32.xlu1 %v3330_v23 }
0x1e5d   :  { %v3335_v26 = vpop.xlane.xlu0 %3334 }
0x1e5e   :  { %v3337_v28 = vmul.f32 0.03125, %v3335_v26 }
0x1e5f   :  { %v3332_v30 = vpop.xlane.xlu1 %3331 }
0x1e60   :  { %v3339_v31 = vsub.f32 %v3327_v6, %v3337_v28  ;;  %v3336_v32 = vmul.f32 0.03125, %v3332_v30 }
0x1e62   :  { %v3338_v35 = vsub.f32 %v3326_v22, %v3336_v32  ;;  %v3341_v33 = vmul.f32 %v3339_v31, %v3339_v31 }
0x1e64   :  { %v3345_v4 = vsel %vm308_vm2, %v3341_v33, 0.0  ;;  %v3340_v37 = vmul.f32 %v3338_v35, %v3338_v35 }
0x1e65   :  { %3346 = vadd.xlane.f32.xlu0 %v3345_v4 }
0x1e66   :  { %v3342_v8 = vsel %vm304_vm1, %v3340_v37, 0.0 }
0x1e67   :  { %3343 = vadd.xlane.f32.xlu1 %v3342_v8 }
0x1eee   :  { %v3347_v39 = vpop.xlane.xlu0 %3346 }
0x1eef   :  { %v3349_v40 = vmul.f32 0.03125, %v3347_v39 }
0x1ef0   :  { %v3344_v27 = vpop.xlane.xlu1 %3343 }
0x1ef1   :  { %v3351_v29 = vadd.f32 1e-06, %v3349_v40  ;;  %v3348_v41 = vmul.f32 0.03125, %v3344_v27 }
0x1ef3   :  { %4163 = vrsqrt.f32 %v3351_v29  ;;  %v3350_v42 = vadd.f32 1e-06, %v3348_v41 }
0x1ef5   :  { %4165 = vrsqrt.f32 %v3350_v42 }
0x1f00   :  { %v4164_v43 = vpop.eup %4163 }
0x1f01   :  { %v3355_v45 = vmul.f32 %v4164_v43, %v3339_v31 }
0x1f02   :  { %v4166_v47 = vpop.eup %4165 }
0x1f03   :  { %v3361_v51 = vmul.f32 %v3586_v44, %v3355_v45  ;;  %v3354_v53 = vmul.f32 %v4166_v47, %v3338_v35 }
0x1f05   :  { %v3367_v54 = vadd.f32 %v3587_v50, %v3361_v51  ;;  %v3360_v58 = vmul.f32 %v3586_v44, %v3354_v53 }
0x1f07   :  { %4053 = vmatpush3.msk.msra.mxu0 %vm558_vm5, %v3367_v54  ;;  %v3366_v59 = vadd.f32 %v3587_v50, %v3360_v58 }
0x1f08   :  { %4054 = vmatprep.subr.mxu0 %v4205_v38 }
0x1f09   :  { %4055 = vmatpush3.msra.mxu0 %v3366_v59 }
0x1f0a   :  { %4057 = vmatmul.mubr.msk.f32.vlgmr.msra.gmra.mxu0 %vm523_vm4, %v3368_v48 }
0x1fca   :  { %v3441_v46 = vpop.f32.mrf.mxu0 }
0x1fcb   :  { %v3445_v49 = vmul.f32 0.2, %v3441_v46 }
0x1fcc   :  { %v4058_v24 = vpop.f32.mrf.mxu0 }
0x1fcd   :  { %v3448_v25 = vsel %vm308_vm2, %v3445_v49, 0.0 }
0x1fce   :  { %3449 = vadd.xlane.f32.xlu0 %v3448_v25 }
0x2057   :  { %v3450_v60 = vpop.xlane.xlu0 %3449 }
0x2058   :  { %v3451_v61 = vmul.f32 0.03125, %v3450_v60 }
0x205a   :  { %v3452_v52 = vsub.f32 %v3445_v49, %v3451_v61 }
0x205c   :  { %v3453_v62 = vmul.f32 %v3452_v52, %v3452_v52 }
0x205e   :  { %v3454_v63 = vsel %vm308_vm2, %v3453_v62, 0.0 }
0x205f   :  { %3455 = vadd.xlane.f32.xlu1 %v3454_v63 }
0x20e8   :  { %v3456_v0 = vpop.xlane.xlu1 %3455 }
0x20e9   :  { %v3457_v1 = vmul.f32 0.03125, %v3456_v0 }
0x20eb   :  { %v3458_v56 = vadd.f32 1e-06, %v3457_v1 }
0x20ed   :  { %4167 = vrsqrt.f32 %v3458_v56 }
0x20fa   :  { %v4168_v2 = vpop.eup %4167 }
0x20fb   :  { %v3460_v34 = vmul.f32 %v4168_v2, %v3452_v52 }
0x20fd   :  { %v3465_v36 = vmul.f32 %v3590_v55, %v3460_v34 }
0x20ff   :  { %v3470_v7 = vadd.f32 %v3591_v3, %v3465_v36 }
0x2101   :  { %3471 = vst.msk [vmem:[#allocation2] sm:$0x3] %vm308_vm2, %v3470_v7 }
0x2102   :  { %4182 = shalt.err (!%p4179_p4)
}
0x2103   :  { %3481 = dma.vmem_to_hbm [thread:$0]  %s3479_s22, 32, %s5027_s14, [#allocation3]  }
0x2104   :  { %4191 = dma.done.wait [#allocation3], 32  }
0x2105   :  { %4192 = vsyncadd [#allocation3], 4294967264 }
0x2106   :  { %3485 = vsyncpa [#allocation3], 1 }

</bundles_post_ra>
